<compile_context>
chip_gen: v7x
topology: tpu7x:2x2x1
jax: 0.10.0
libtpu: 0.0.40
codegen_flags: <defaults>
</compile_context>

<pallas_src>
import functools
import math

import jax
import jax.numpy as jnp
import numpy as np
from jax.experimental import pallas as pl
from jax.experimental.pallas import tpu as pltpu

_TM = 512                       # preferred M (rows = B*L) tile
_TK = 512                       # K tile, only used when K > _K_TILE_MIN
_K_TILE_MIN = 1024
_VMEM_LIMIT = 48 * 1024 * 1024  # leave headroom on v7x (64 MiB physical VMEM)
_BATCH_BYTES_BUDGET = 8 * 1024 * 1024


def _round_up(v, m):
    return (v + m - 1) // m * m


def _cparams(sem):
    return pltpu.CompilerParams(dimension_semantics=sem,
                                vmem_limit_bytes=_VMEM_LIMIT)


def _batch_tile(B, bytes_per_batch):
    """Batches per grid step: VMEM-budgeted, divides B, keeps >=2 steps (megacore)."""
    bt = max(1, min(B, _BATCH_BYTES_BUDGET // max(int(bytes_per_batch), 1)))
    bt = min(bt, max(1, B // 2))        # keep >=2 parallel steps when B >= 2 (v7x)
    while B % bt:
        bt -= 1
    return bt


def _bf16(x):
    return x.astype(jnp.bfloat16)


def _apply_act(y, act):
    if act == "relu":
        return jnp.maximum(y, 0.0)
    if act == "gelu":
        # exact (erf) GELU to match PyTorch F.gelu default numerics
        return 0.5 * y * (1.0 + jax.lax.erf(y * (1.0 / math.sqrt(2.0))))
    return y


# ----------------------------------------------------------------------------
# Tiled linear: out = act(x @ w + b) (+ residual), bf16 MXU / f32 accumulate
# ----------------------------------------------------------------------------
def _mm_kernel(act, has_bias, has_res, x_ref, w_ref, *refs):
    refs = list(refs)
    b_ref = refs.pop(0) if has_bias else None
    r_ref = refs.pop(0) if has_res else None
    o_ref, acc_ref = refs

    @pl.when(pl.program_id(1) == 0)
    def _init():
        acc_ref[...] = jnp.zeros_like(acc_ref)

    acc_ref[...] += jnp.dot(_bf16(x_ref[...]), _bf16(w_ref[...]),
                            preferred_element_type=jnp.float32)

    @pl.when(pl.program_id(1) == pl.num_programs(1) - 1)
    def _finish():
        acc = acc_ref[...]
        if has_bias:
            acc = acc + b_ref[...].astype(jnp.float32)
        acc = _apply_act(acc, act)
        if has_res:
            acc = acc + r_ref[...].astype(jnp.float32)
        o_ref[...] = acc.astype(o_ref.dtype)


def pl_linear(x, w, bias=None, act=None, residual=None):
    """Linear over the last axis with fused bias / activation / residual-add."""
    lead = x.shape[:-1]
    K = x.shape[-1]
    K2, N = w.shape
    assert K == K2
    x2 = x.reshape(-1, K)
    M = x2.shape[0]

    tm = min(_TM, _round_up(M, 8))
    Mp = _round_up(M, tm)
    if K > _K_TILE_MIN:
        tk = _TK
        Kp = _round_up(K, tk)
    else:
        tk, Kp = K, K
    if Mp != M or Kp != K:
        x2 = jnp.pad(x2, ((0, Mp - M), (0, Kp - K)))
    if Kp != K:
        w = jnp.pad(w, ((0, Kp - K), (0, 0)))

    args = [x2, w]
    in_specs = [pl.BlockSpec((tm, tk), lambda mi, ki: (mi, ki)),
                pl.BlockSpec((tk, N), lambda mi, ki: (ki, 0))]
    has_bias = bias is not None
    if has_bias:
        args.append(bias.reshape(1, N).astype(jnp.float32))
        in_specs.append(pl.BlockSpec((1, N), lambda mi, ki: (0, 0)))
    has_res = residual is not None
    if has_res:
        r2 = residual.reshape(-1, N)
        if Mp != M:
            r2 = jnp.pad(r2, ((0, Mp - M), (0, 0)))
        args.append(r2)
        in_specs.append(pl.BlockSpec((tm, N), lambda mi, ki: (mi, 0)))

    out = pl.pallas_call(
        functools.partial(_mm_kernel, act, has_bias, has_res),
        out_shape=jax.ShapeDtypeStruct((Mp, N), x.dtype),
        grid=(Mp // tm, Kp // tk),
        in_specs=in_specs,
        out_specs=pl.BlockSpec((tm, N), lambda mi, ki: (mi, 0)),
        scratch_shapes=[pltpu.VMEM((tm, N), jnp.float32)],
        compiler_params=_cparams(("parallel", "arbitrary")),
    )(*args)
    if Mp != M:
        out = out[:M]
    return out.reshape(lead + (N,))


# ----------------------------------------------------------------------------
# Fused FFN: x + conv2(act(conv1(x)))   (kernel-size-1 convs, bias=False)
# ----------------------------------------------------------------------------
def _ffn_kernel(act, x_ref, w1_ref, w2_ref, o_ref):
    y = jnp.dot(_bf16(x_ref[...]), _bf16(w1_ref[...]),
                preferred_element_type=jnp.float32)
    y = _apply_act(y, act)
    y = jnp.dot(_bf16(y), _bf16(w2_ref[...]),
                preferred_element_type=jnp.float32)
    # Residual re-read from the VMEM ref in the epilogue so the f32 copy of x
    # is not live across both matmuls (reduces vreg/VMEM pressure).
    o_ref[...] = (x_ref[...].astype(jnp.float32) + y).astype(o_ref.dtype)


def pl_ffn(x, w1, w2, act):
    lead = x.shape[:-1]
    D = x.shape[-1]
    F = w1.shape[1]
    x2 = x.reshape(-1, D)
    M = x2.shape[0]
    tm = min(_TM, _round_up(M, 8))
    Mp = _round_up(M, tm)
    if Mp != M:
        x2 = jnp.pad(x2, ((0, Mp - M), (0, 0)))
    # TODO(synk): on v7x add pipeline_mode=pl.Buffered(1) to the constant-index
    #   w1/w2 BlockSpecs so the big FFN weights are not double-buffered.
    out = pl.pallas_call(
        functools.partial(_ffn_kernel, act),
        out_shape=jax.ShapeDtypeStruct((Mp, D), x.dtype),
        grid=(Mp // tm,),
        in_specs=[pl.BlockSpec((tm, D), lambda mi: (mi, 0)),
                  pl.BlockSpec((D, F), lambda mi: (0, 0)),
                  pl.BlockSpec((F, D), lambda mi: (0, 0))],
        out_specs=pl.BlockSpec((tm, D), lambda mi: (mi, 0)),
        compiler_params=_cparams(("parallel",)),
    )(x2, w1, w2)
    if Mp != M:
        out = out[:M]
    return out.reshape(lead + (D,))


# ----------------------------------------------------------------------------
# series_decomp: moving average as a banded [L, L] matmul, season = x - trend.
# Several batches processed per grid step to amortize per-step overhead.
# ----------------------------------------------------------------------------
@functools.lru_cache(maxsize=None)
def _moving_avg_matrix(L, ksize):
    # AvgPool1d(k, stride=1) over replicate-padded x, expressed as [L, L] matrix.
    assert ksize % 2 == 1, "series_decomp expects an odd moving_avg kernel"
    pad = (ksize - 1) // 2
    a = np.zeros((L, L), np.float32)
    for t in range(L):
        for j in range(ksize):
            s = min(max(t - pad + j, 0), L - 1)
            a[t, s] += 1.0 / ksize
    return a


def _decomp_kernel(bt, a_ref, x_ref, season_ref, trend_ref):
    a = _bf16(a_ref[...])                                   # [L, L]
    for b in range(bt):                                     # static unrolled
        x = x_ref[b]                                        # [L, D]
        trend = jnp.dot(a, _bf16(x), preferred_element_type=jnp.float32)
        trend_ref[b] = trend.astype(trend_ref.dtype)
        season_ref[b] = (x.astype(jnp.float32) - trend).astype(season_ref.dtype)


def series_decomp(x, ksize):
    B, L, D = x.shape
    a = jnp.asarray(_moving_avg_matrix(L, ksize))
    bt = _batch_tile(B, 3 * L * D * 4)
    season, trend = pl.pallas_call(
        functools.partial(_decomp_kernel, bt),
        out_shape=(jax.ShapeDtypeStruct((B, L, D), x.dtype),
                   jax.ShapeDtypeStruct((B, L, D), x.dtype)),
        grid=(B // bt,),
        in_specs=[pl.BlockSpec((L, L), lambda b: (0, 0)),
                  pl.BlockSpec((bt, L, D), lambda b: (b, 0, 0))],
        out_specs=(pl.BlockSpec((bt, L, D), lambda b: (b, 0, 0)),
                   pl.BlockSpec((bt, L, D), lambda b: (b, 0, 0))),
        compiler_params=_cparams(("parallel",)),
    )(a, x)
    return season, trend


# ----------------------------------------------------------------------------
# my_Layernorm: LayerNorm(d_model) then subtract the per-batch time-mean
# ----------------------------------------------------------------------------
def _ln_kernel(x_ref, g_ref, b_ref, o_ref):
    x = x_ref[...].astype(jnp.float32)                      # [bt, L, D]
    mu = jnp.mean(x, axis=-1, keepdims=True)
    var = jnp.mean(jnp.square(x - mu), axis=-1, keepdims=True)
    xh = (x - mu) * jax.lax.rsqrt(var + 1e-5)
    xh = xh * g_ref[...][None] + b_ref[...][None]
    xh = xh - jnp.mean(xh, axis=1, keepdims=True)           # my_Layernorm bias
    o_ref[...] = xh.astype(o_ref.dtype)


def my_layernorm(x, gamma, beta):
    B, L, D = x.shape
    bt = _batch_tile(B, 2 * L * D * 4)
    return pl.pallas_call(
        _ln_kernel,
        out_shape=jax.ShapeDtypeStruct((B, L, D), x.dtype),
        grid=(B // bt,),
        in_specs=[pl.BlockSpec((bt, L, D), lambda b: (b, 0, 0)),
                  pl.BlockSpec((1, D), lambda b: (0, 0)),
                  pl.BlockSpec((1, D), lambda b: (0, 0))],
        out_specs=pl.BlockSpec((bt, L, D), lambda b: (b, 0, 0)),
        compiler_params=_cparams(("parallel",)),
    )(x, gamma.reshape(1, D).astype(jnp.float32),
      beta.reshape(1, D).astype(jnp.float32))


# ----------------------------------------------------------------------------
# DataEmbedding_wo_pos: the circular conv (k=3) taps are pre-shifted on the
# *tiny* raw input (Cin ~ 4-7) and concatenated with x_mark along K, so the
# whole embedding collapses into ONE pl_linear matmul (batch folded into M).
# ----------------------------------------------------------------------------
def pl_data_embedding(x, x_mark, w_tok, w_time):
    xm = x_mark.astype(x.dtype)
    x_cat = jnp.concatenate(
        [jnp.roll(x, 1, axis=1), x, jnp.roll(x, -1, axis=1), xm], axis=-1)
    w_cat = jnp.concatenate([w_tok[0], w_tok[1], w_tok[2], w_time], axis=0)
    return pl_linear(x_cat, w_cat)


# ----------------------------------------------------------------------------
# Decoder trend projection: trend_acc + CircularConv3(trend1+trend2+trend3).
# The circular shift of each tap is a pltpu.roll (XLU, near-free) on the small
# projected [L, c_out] output; trend1+2+3 and the running-trend add are fused.
# ----------------------------------------------------------------------------
def _trend_kernel(bt, shifts, t1_ref, t2_ref, t3_ref, tacc_ref, w_ref, o_ref):
    w_taps = [w_ref[j] for j in range(3)]                   # each [D, C] (bf16)
    for b in range(bt):
        t = _bf16(t1_ref[b] + t2_ref[b] + t3_ref[b])        # [L, D]
        acc = tacc_ref[b].astype(jnp.float32)               # [L, C]
        for j in range(3):
            p = jnp.dot(t, w_taps[j], preferred_element_type=jnp.float32)
            if shifts[j]:
                p = pltpu.roll(p, shifts[j], axis=0)
            acc = acc + p
        o_ref[b] = acc.astype(o_ref.dtype)


def pl_trend_project(t1, t2, t3, trend_acc, w_trend):
    B, L, D = t1.shape
    C = w_trend.shape[-1]
    bt = _batch_tile(B, (3 * L * D + 2 * L * C) * 4)
    shifts = (1, 0, L - 1)          # tap j contributes x[(t-1+j) % L]
    return pl.pallas_call(
        functools.partial(_trend_kernel, bt, shifts),
        out_shape=jax.ShapeDtypeStruct((B, L, C), trend_acc.dtype),
        grid=(B // bt,),
        in_specs=[pl.BlockSpec((bt, L, D), lambda b: (b, 0, 0)),
                  pl.BlockSpec((bt, L, D), lambda b: (b, 0, 0)),
                  pl.BlockSpec((bt, L, D), lambda b: (b, 0, 0)),
                  pl.BlockSpec((bt, L, C), lambda b: (b, 0, 0)),
                  pl.BlockSpec((3, D, C), lambda b: (0, 0, 0))],
        out_specs=pl.BlockSpec((bt, L, C), lambda b: (b, 0, 0)),
        compiler_params=_cparams(("parallel",)),
    )(t1, t2, t3, trend_acc, w_trend)


# ----------------------------------------------------------------------------
# Auto-correlation: FFT + top-k stay in XLA, but the time-delay aggregation is
# a Pallas kernel (weighted-circulant [L, L] matmul per batch -> V read once).
# ----------------------------------------------------------------------------
def _delay_agg_kernel(bt, v_ref, m_ref, o_ref):
    for b in range(bt):
        o_ref[b] = jnp.dot(_bf16(v_ref[b]), _bf16(m_ref[b]),
                           preferred_element_type=jnp.float32).astype(o_ref.dtype)


def pl_delay_agg(v2, magg):
    # v2: (B, H*E, L) values, magg: (B, L, L) with magg[s, t] = sum_i w_i [(s-t)%L == d_i]
    B, HE, L = v2.shape
    bt = _batch_tile(B, (2 * HE * L + L * L) * 4)
    return pl.pallas_call(
        functools.partial(_delay_agg_kernel, bt),
        out_shape=jax.ShapeDtypeStruct((B, HE, L), v2.dtype),
        grid=(B // bt,),
        in_specs=[pl.BlockSpec((bt, HE, L), lambda b: (b, 0, 0)),
                  pl.BlockSpec((bt, L, L), lambda b: (b, 0, 0))],
        out_specs=pl.BlockSpec((bt, HE, L), lambda b: (b, 0, 0)),
        compiler_params=_cparams(("parallel",)),
    )(v2, magg)


def auto_correlation(q, k, v, factor):
    # TODO(synk): rfft/irfft and top-k/softmax have no Pallas equivalent -> XLA.
    B, L, H, E = q.shape
    S = v.shape[1]
    if L > S:
        pad = jnp.zeros((B, L - S, H, E), q.dtype)
        v = jnp.concatenate([v, pad], axis=1)
        k = jnp.concatenate([k, pad], axis=1)
    else:
        v = v[:, :L]
        k = k[:, :L]
    qt = jnp.transpose(q, (0, 2, 3, 1))                     # (B, H, E, L)
    kt = jnp.transpose(k, (0, 2, 3, 1))
    vt = jnp.transpose(v, (0, 2, 3, 1))
    q_fft = jnp.fft.rfft(qt, axis=-1)
    k_fft = jnp.fft.rfft(kt, axis=-1)
    corr = jnp.fft.irfft(q_fft * jnp.conj(k_fft), n=L, axis=-1)   # (B, H, E, L)

    top_k = max(1, int(factor * math.log(L)))
    mean_value = jnp.mean(corr, axis=(1, 2))                # (B, L)
    weights, delay = jax.lax.top_k(mean_value, top_k)       # (B, top_k)
    tmp_corr = jax.nn.softmax(weights, axis=-1)

    idx = jnp.arange(L, dtype=jnp.int32)
    diff = jnp.mod(idx[:, None] - idx[None, :], L)          # diff[s, t] = (s - t) % L
    magg = jnp.zeros((B, L, L), jnp.float32)
    for i in range(top_k):                                  # top_k is small (~factor*logL)
        hit = (diff[None, :, :] == delay[:, i, None, None]).astype(jnp.float32)
        magg = magg + tmp_corr[:, i, None, None] * hit

    v2 = vt.reshape(B, H * E, L)
    agg = pl_delay_agg(v2, magg).reshape(B, H, E, L)        # one MXU matmul per batch
    return jnp.transpose(agg, (0, 3, 1, 2))                 # (B, L, H, E)


def self_correlation_layer(p, x, n_heads, factor):
    B, L, _ = x.shape
    d_model = p['wo'].shape[0]
    qkv = pl_linear(x, p['wqkv'], p['bqkv'])                # fused Q|K|V projection
    q = qkv[..., :d_model].reshape(B, L, n_heads, -1)
    k = qkv[..., d_model:2 * d_model].reshape(B, L, n_heads, -1)
    v = qkv[..., 2 * d_model:].reshape(B, L, n_heads, -1)
    out = auto_correlation(q, k, v, factor).reshape(B, L, -1)
    return pl_linear(out, p['wo'], p['bo'], residual=x)     # out-proj + residual


def cross_correlation_layer(p, x, cross, n_heads, factor):
    B, L, _ = x.shape
    S = cross.shape[1]
    d_model = p['wo'].shape[0]
    q = pl_linear(x, p['wq'], p['bq']).reshape(B, L, n_heads, -1)
    kv = pl_linear(cross, p['wkv'], p['bkv'])               # fused K|V projection
    k = kv[..., :d_model].reshape(B, S, n_heads, -1)
    v = kv[..., d_model:].reshape(B, S, n_heads, -1)
    out = auto_correlation(q, k, v, factor).reshape(B, L, -1)
    return pl_linear(out, p['wo'], p['bo'], residual=x)


def encoder_layer(p, x, ksize, factor, n_heads, act):
    x = self_correlation_layer(p['attn'], x, n_heads, factor)
    x, _ = series_decomp(x, ksize)
    y = pl_ffn(x, p['w1'], p['w2'], act)                    # x + conv2(act(conv1(x)))
    res, _ = series_decomp(y, ksize)
    return res


def decoder_layer(p, x, cross, ksize, factor, n_heads, act):
    x = self_correlation_layer(p['self_attn'], x, n_heads, factor)
    x, trend1 = series_decomp(x, ksize)
    x = cross_correlation_layer(p['cross_attn'], x, cross, n_heads, factor)
    x, trend2 = series_decomp(x, ksize)
    y = pl_ffn(x, p['w1'], p['w2'], act)
    x, trend3 = series_decomp(y, ksize)
    return x, trend1, trend2, trend3


def autoformer_forward(params, cfg, x_enc, x_mark_enc, x_dec, x_mark_dec):
    pred_len = cfg['pred_len']
    label_len = cfg['label_len']
    ksize = cfg['moving_avg']

    mean = jnp.repeat(jnp.mean(x_enc, axis=1, keepdims=True), pred_len, axis=1)
    zeros = jnp.zeros((x_dec.shape[0], pred_len, x_dec.shape[2]), x_enc.dtype)
    seasonal_init, trend_init = series_decomp(x_enc, ksize)
    trend_init = jnp.concatenate([trend_init[:, -label_len:, :], mean], axis=1)
    seasonal_init = jnp.concatenate([seasonal_init[:, -label_len:, :], zeros], axis=1)

    enc_out = pl_data_embedding(x_enc, x_mark_enc,
                                params['enc_emb']['w_tok'],
                                params['enc_emb']['w_time'])
    for lp in params['enc_layers']:
        enc_out = encoder_layer(lp, enc_out, ksize, cfg['factor'],
                                cfg['n_heads'], cfg['activation'])
    enc_out = my_layernorm(enc_out, params['enc_norm_g'], params['enc_norm_b'])

    x = pl_data_embedding(seasonal_init, x_mark_dec,
                          params['dec_emb']['w_tok'], params['dec_emb']['w_time'])
    trend = trend_init
    for lp in params['dec_layers']:
        x, t1, t2, t3 = decoder_layer(lp, x, enc_out, ksize, cfg['factor'],
                                      cfg['n_heads'], cfg['activation'])
        trend = pl_trend_project(t1, t2, t3, trend, lp['w_trend'])
    x = my_layernorm(x, params['dec_norm_g'], params['dec_norm_b'])
    # final Linear(d_model -> c_out) with the `trend + seasonal` add fused in
    # TODO(synk): c_out < 128 -> masked stores; pad N to 128 if it shows up in profiles.
    dec_out = pl_linear(x, params['w_proj'], params['b_proj'], residual=trend)
    return dec_out[:, -pred_len:, :]


# ----------------------------------------------------------------------------
# Deterministic parameter init (matmul weights stored in bf16, biases/norm f32;
# QKV / KV weights stored pre-fused, as a PyTorch->JAX converter would do).
# ----------------------------------------------------------------------------
def init_params(key, cfg):
    d_model, d_ff = cfg['d_model'], cfg['d_ff']
    enc_in, dec_in, c_out = cfg['enc_in'], cfg['dec_in'], cfg['c_out']
    mark_dim = cfg['mark_dim']
    keys = iter(jax.random.split(key, 512))

    def w(shape, scale=0.05):                       # matmul weights -> bf16
        return (scale * jax.random.normal(next(keys), shape)).astype(jnp.bfloat16)

    def b(shape, scale=0.05):                       # biases -> f32
        return (scale * jax.random.normal(next(keys), shape)).astype(jnp.float32)

    def self_attn():
        return dict(wqkv=w((d_model, 3 * d_model)), bqkv=b((3 * d_model,)),
                    wo=w((d_model, d_model)), bo=b((d_model,)))

    def cross_attn():
        return dict(wq=w((d_model, d_model)), bq=b((d_model,)),
                    wkv=w((d_model, 2 * d_model)), bkv=b((2 * d_model,)),
                    wo=w((d_model, d_model)), bo=b((d_model,)))

    params = dict(
        enc_emb=dict(w_tok=w((3, enc_in, d_model)), w_time=w((mark_dim, d_model))),
        dec_emb=dict(w_tok=w((3, dec_in, d_model)), w_time=w((mark_dim, d_model))),
        enc_layers=[dict(attn=self_attn(),
                         w1=w((d_model, d_ff)), w2=w((d_ff, d_model)))
                    for _ in range(cfg['e_layers'])],
        enc_norm_g=jnp.ones((d_model,), jnp.float32),
        enc_norm_b=jnp.zeros((d_model,), jnp.float32),
        dec_layers=[dict(self_attn=self_attn(), cross_attn=cross_attn(),
                         w1=w((d_model, d_ff)), w2=w((d_ff, d_model)),
                         w_trend=w((3, d_model, c_out)))
                    for _ in range(cfg['d_layers'])],
        dec_norm_g=jnp.ones((d_model,), jnp.float32),
        dec_norm_b=jnp.zeros((d_model,), jnp.float32),
        w_proj=w((d_model, c_out)),
        b_proj=jnp.zeros((c_out,), jnp.float32),
    )
    return params


# ----------------------------------------------------------------------------
if __name__ == "__main__":
    cfg = dict(seq_len=16, label_len=8, pred_len=8,
               enc_in=4, dec_in=4, c_out=4,
               d_model=32, n_heads=4, d_ff=64,
               e_layers=1, d_layers=1,
               moving_avg=5, factor=1, mark_dim=4,  # freq='h' -> 4 time features
               activation='relu')

    key = jax.random.PRNGKey(0)
    kp, k1, k2, k3, k4 = jax.random.split(key, 5)
    params = init_params(kp, cfg)

    B = 2
    dec_len = cfg['label_len'] + cfg['pred_len']
    x_enc = jax.random.normal(k1, (B, cfg['seq_len'], cfg['enc_in']), jnp.float32)
    x_mark_enc = jax.random.normal(k2, (B, cfg['seq_len'], cfg['mark_dim']), jnp.float32)
    x_dec = jax.random.normal(k3, (B, dec_len, cfg['dec_in']), jnp.float32)
    x_mark_dec = jax.random.normal(k4, (B, dec_len, cfg['mark_dim']), jnp.float32)

    fwd = jax.jit(lambda p, a, b_, c, d: autoformer_forward(p, cfg, a, b_, c, d))
    out = fwd(params, x_enc, x_mark_enc, x_dec, x_mark_dec)
    out = jax.block_until_ready(out)
    assert out.shape == (B, cfg['pred_len'], cfg['c_out']), out.shape
    assert bool(jnp.all(jnp.isfinite(out)))
    print("KERNEL_OK")
</pallas_src>

<mosaic_0001>
module attributes {stable_mosaic.version = 11 : i64} {
  func.func @_mm_kernel(%arg0: i32, %arg1: i32, %arg2: memref<32x16xf32, #tpu.memory_space<vmem>>, %arg3: memref<16x32xbf16, #tpu.memory_space<vmem>>, %arg4: memref<32x32xf32, #tpu.memory_space<vmem>>, %arg5: memref<32x32xf32, #tpu.memory_space<vmem>>) attributes {dimension_semantics = [#tpu.dimension_semantics<parallel>, #tpu.dimension_semantics<arbitrary>], iteration_bounds = array<i64: 1, 1>, scalar_prefetch = 0 : i64, scratch_operands = 1 : i64, tpu.core_type = #tpu.core_type<tc>, window_params = [{transform_indices = @transform_0, window_bounds = array<i64: 32, 16>}, {transform_indices = @transform_1, window_bounds = array<i64: 16, 32>}, {transform_indices = @transform_2, window_bounds = array<i64: 32, 32>}]} {
    %c0_i32 = arith.constant 0 : i32
    %0 = arith.cmpi eq, %arg1, %c0_i32 : i32
    %1 = arith.extui %0 : i1 to i32
    %c0_i32_0 = arith.constant 0 : i32
    %2 = arith.cmpi ne, %1, %c0_i32_0 : i32
    scf.if %2 {
      %cst_10 = arith.constant 0.000000e+00 : f32
      %13 = vector.broadcast %cst_10 : f32 to vector<32x32xf32>
      %c0_11 = arith.constant 0 : index
      %c0_12 = arith.constant 0 : index
      %14 = vector.load %arg5[%c0_11, %c0_12] : memref<32x32xf32, #tpu.memory_space<vmem>>, vector<32x32xf32>
      tpu.vector_store %arg5[%c0_11, %c0_12], %13 {strides = array<i32>} : memref<32x32xf32, #tpu.memory_space<vmem>>, vector<32x32xf32>,
    } else {
    }
    %c0 = arith.constant 0 : index
    %c0_1 = arith.constant 0 : index
    %3 = vector.load %arg5[%c0, %c0_1] : memref<32x32xf32, #tpu.memory_space<vmem>>, vector<32x32xf32>
    %c0_2 = arith.constant 0 : index
    %c0_3 = arith.constant 0 : index
    %4 = vector.load %arg2[%c0_2, %c0_3] : memref<32x16xf32, #tpu.memory_space<vmem>>, vector<32x16xf32>
    %5 = arith.truncf %4 : vector<32x16xf32> to vector<32x16xbf16>
    %c0_4 = arith.constant 0 : index
    %c0_5 = arith.constant 0 : index
    %6 = vector.load %arg3[%c0_4, %c0_5] : memref<16x32xbf16, #tpu.memory_space<vmem>>, vector<16x32xbf16>
    %cst = arith.constant dense<0.000000e+00> : vector<32x32xf32>
    %7 = tpu.matmul %5, %6, %cst {dimension_numbers = #tpu.dot_dimension_numbers<[1], [0], [0], [1], [0, 0, 1, 1], [], []>} : vector<32x16xbf16>, vector<16x32xbf16>, vector<32x32xf32> -> vector<32x32xf32>
    %8 = arith.addf %3, %7 : vector<32x32xf32>
    %c0_6 = arith.constant 0 : index
    %c0_7 = arith.constant 0 : index
    %9 = vector.load %arg5[%c0_6, %c0_7] : memref<32x32xf32, #tpu.memory_space<vmem>>, vector<32x32xf32>
    tpu.vector_store %arg5[%c0_6, %c0_7], %8 {strides = array<i32>} : memref<32x32xf32, #tpu.memory_space<vmem>>, vector<32x32xf32>,
    %c0_i32_8 = arith.constant 0 : i32
    %10 = arith.cmpi eq, %arg1, %c0_i32_8 : i32
    %11 = arith.extui %10 : i1 to i32
    %c0_i32_9 = arith.constant 0 : i32
    %12 = arith.cmpi ne, %11, %c0_i32_9 : i32
    scf.if %12 {
      %c0_10 = arith.constant 0 : index
      %c0_11 = arith.constant 0 : index
      %13 = vector.load %arg5[%c0_10, %c0_11] : memref<32x32xf32, #tpu.memory_space<vmem>>, vector<32x32xf32>
      %c0_12 = arith.constant 0 : index
      %c0_13 = arith.constant 0 : index
      %14 = vector.load %arg4[%c0_12, %c0_13] : memref<32x32xf32, #tpu.memory_space<vmem>>, vector<32x32xf32>
      tpu.vector_store %arg4[%c0_12, %c0_13], %13 {strides = array<i32>} : memref<32x32xf32, #tpu.memory_space<vmem>>, vector<32x32xf32>,
    } else {
    }
    return
  }
  func.func @transform_0(%arg0: i32, %arg1: i32) -> (i32, i32) {
    %c0_i32 = arith.constant 0 : i32
    return %arg0, %arg1 : i32, i32
  }
  func.func @transform_1(%arg0: i32, %arg1: i32) -> (i32, i32) {
    %c0_i32 = arith.constant 0 : i32
    %c0_i32_0 = arith.constant 0 : i32
    return %arg1, %c0_i32 : i32, i32
  }
  func.func @transform_2(%arg0: i32, %arg1: i32) -> (i32, i32) {
    %c0_i32 = arith.constant 0 : i32
    %c0_i32_0 = arith.constant 0 : i32
    return %arg0, %c0_i32 : i32, i32
  }
}

module attributes {stable_mosaic.version = 11 : i64} {
  func.func @_mm_kernel(%arg0: i32, %arg1: i32, %arg2: memref<32x32xf32, #tpu.memory_space<vmem>>, %arg3: memref<32x96xbf16, #tpu.memory_space<vmem>>, %arg4: memref<1x96xf32, #tpu.memory_space<vmem>>, %arg5: memref<32x96xf32, #tpu.memory_space<vmem>>, %arg6: memref<32x96xf32, #tpu.memory_space<vmem>>) attributes {dimension_semantics = [#tpu.dimension_semantics<parallel>, #tpu.dimension_semantics<arbitrary>], iteration_bounds = array<i64: 1, 1>, scalar_prefetch = 0 : i64, scratch_operands = 1 : i64, tpu.core_type = #tpu.core_type<tc>, window_params = [{transform_indices = @transform_0, window_bounds = array<i64: 32, 32>}, {transform_indices = @transform_1, window_bounds = array<i64: 32, 96>}, {pipeline_mode = #tpu.pipeline_mode<synchronous>, transform_indices = @transform_2, window_bounds = array<i64: 1, 96>}, {transform_indices = @transform_3, window_bounds = array<i64: 32, 96>}]} {
    %c0_i32 = arith.constant 0 : i32
    %0 = arith.cmpi eq, %arg1, %c0_i32 : i32
    %1 = arith.extui %0 : i1 to i32
    %c0_i32_0 = arith.constant 0 : i32
    %2 = arith.cmpi ne, %1, %c0_i32_0 : i32
    scf.if %2 {
      %cst_10 = arith.constant 0.000000e+00 : f32
      %13 = vector.broadcast %cst_10 : f32 to vector<32x96xf32>
      %c0_11 = arith.constant 0 : index
      %c0_12 = arith.constant 0 : index
      %14 = vector.load %arg6[%c0_11, %c0_12] : memref<32x96xf32, #tpu.memory_space<vmem>>, vector<32x96xf32>
      tpu.vector_store %arg6[%c0_11, %c0_12], %13 {strides = array<i32>} : memref<32x96xf32, #tpu.memory_space<vmem>>, vector<32x96xf32>,
    } else {
    }
    %c0 = arith.constant 0 : index
    %c0_1 = arith.constant 0 : index
    %3 = vector.load %arg6[%c0, %c0_1] : memref<32x96xf32, #tpu.memory_space<vmem>>, vector<32x96xf32>
    %c0_2 = arith.constant 0 : index
    %c0_3 = arith.constant 0 : index
    %4 = vector.load %arg2[%c0_2, %c0_3] : memref<32x32xf32, #tpu.memory_space<vmem>>, vector<32x32xf32>
    %5 = arith.truncf %4 : vector<32x32xf32> to vector<32x32xbf16>
    %c0_4 = arith.constant 0 : index
    %c0_5 = arith.constant 0 : index
    %6 = vector.load %arg3[%c0_4, %c0_5] : memref<32x96xbf16, #tpu.memory_space<vmem>>, vector<32x96xbf16>
    %cst = arith.constant dense<0.000000e+00> : vector<32x96xf32>
    %7 = tpu.matmul %5, %6, %cst {dimension_numbers = #tpu.dot_dimension_numbers<[1], [0], [0], [1], [0, 0, 1, 1], [], []>} : vector<32x32xbf16>, vector<32x96xbf16>, vector<32x96xf32> -> vector<32x96xf32>
    %8 = arith.addf %3, %7 : vector<32x96xf32>
    %c0_6 = arith.constant 0 : index
    %c0_7 = arith.constant 0 : index
    %9 = vector.load %arg6[%c0_6, %c0_7] : memref<32x96xf32, #tpu.memory_space<vmem>>, vector<32x96xf32>
    tpu.vector_store %arg6[%c0_6, %c0_7], %8 {strides = array<i32>} : memref<32x96xf32, #tpu.memory_space<vmem>>, vector<32x96xf32>,
    %c0_i32_8 = arith.constant 0 : i32
    %10 = arith.cmpi eq, %arg1, %c0_i32_8 : i32
    %11 = arith.extui %10 : i1 to i32
    %c0_i32_9 = arith.constant 0 : i32
    %12 = arith.cmpi ne, %11, %c0_i32_9 : i32
    scf.if %12 {
      %c0_10 = arith.constant 0 : index
      %c0_11 = arith.constant 0 : index
      %13 = vector.load %arg6[%c0_10, %c0_11] : memref<32x96xf32, #tpu.memory_space<vmem>>, vector<32x96xf32>
      %c0_12 = arith.constant 0 : index
      %c0_13 = arith.constant 0 : index
      %14 = vector.load %arg4[%c0_12, %c0_13] : memref<1x96xf32, #tpu.memory_space<vmem>>, vector<1x96xf32>
      %15 = vector.broadcast %14 : vector<1x96xf32> to vector<32x96xf32>
      %16 = arith.addf %13, %15 : vector<32x96xf32>
      %c0_14 = arith.constant 0 : index
      %c0_15 = arith.constant 0 : index
      %17 = vector.load %arg5[%c0_14, %c0_15] : memref<32x96xf32, #tpu.memory_space<vmem>>, vector<32x96xf32>
      tpu.vector_store %arg5[%c0_14, %c0_15], %16 {strides = array<i32>} : memref<32x96xf32, #tpu.memory_space<vmem>>, vector<32x96xf32>,
    } else {
    }
    return
  }
  func.func @transform_0(%arg0: i32, %arg1: i32) -> (i32, i32) {
    %c0_i32 = arith.constant 0 : i32
    return %arg0, %arg1 : i32, i32
  }
  func.func @transform_1(%arg0: i32, %arg1: i32) -> (i32, i32) {
    %c0_i32 = arith.constant 0 : i32
    %c0_i32_0 = arith.constant 0 : i32
    return %arg1, %c0_i32 : i32, i32
  }
  func.func @transform_2(%arg0: i32, %arg1: i32) -> (i32, i32) {
    %c0_i32 = arith.constant 0 : i32
    %c0_i32_0 = arith.constant 0 : i32
    %c0_i32_1 = arith.constant 0 : i32
    return %c0_i32, %c0_i32_0 : i32, i32
  }
  func.func @transform_3(%arg0: i32, %arg1: i32) -> (i32, i32) {
    %c0_i32 = arith.constant 0 : i32
    %c0_i32_0 = arith.constant 0 : i32
    return %arg0, %c0_i32 : i32, i32
  }
}

module attributes {stable_mosaic.version = 11 : i64} {
  func.func @_decomp_kernel(%arg0: i32, %arg1: memref<16x16xf32, #tpu.memory_space<vmem>>, %arg2: memref<1x16x4xf32, #tpu.memory_space<vmem>>, %arg3: memref<1x16x4xf32, #tpu.memory_space<vmem>>, %arg4: memref<1x16x4xf32, #tpu.memory_space<vmem>>) attributes {dimension_semantics = [#tpu.dimension_semantics<parallel>], iteration_bounds = array<i64: 2>, scalar_prefetch = 0 : i64, scratch_operands = 0 : i64, tpu.core_type = #tpu.core_type<tc>, window_params = [{pipeline_mode = #tpu.pipeline_mode<synchronous>, transform_indices = @transform_0, window_bounds = array<i64: 16, 16>}, {transform_indices = @transform_1, window_bounds = array<i64: 1, 16, 4>}, {transform_indices = @transform_2, window_bounds = array<i64: 1, 16, 4>}, {transform_indices = @transform_3, window_bounds = array<i64: 1, 16, 4>}]} {
    %c0 = arith.constant 0 : index
    %c0_0 = arith.constant 0 : index
    %0 = vector.load %arg1[%c0, %c0_0] : memref<16x16xf32, #tpu.memory_space<vmem>>, vector<16x16xf32>
    %1 = arith.truncf %0 : vector<16x16xf32> to vector<16x16xbf16>
    %c0_1 = arith.constant 0 : index
    %c0_2 = arith.constant 0 : index
    %c0_3 = arith.constant 0 : index
    %2 = vector.load %arg2[%c0_1, %c0_2, %c0_3] : memref<1x16x4xf32, #tpu.memory_space<vmem>>, vector<1x16x4xf32>
    %3 = vector.shape_cast %2 : vector<1x16x4xf32> to vector<16x4xf32>
    %4 = arith.truncf %3 : vector<16x4xf32> to vector<16x4xbf16>
    %cst = arith.constant dense<0.000000e+00> : vector<16x4xf32>
    %5 = tpu.matmul %1, %4, %cst {dimension_numbers = #tpu.dot_dimension_numbers<[1], [0], [0], [1], [0, 0, 1, 1], [], []>} : vector<16x16xbf16>, vector<16x4xbf16>, vector<16x4xf32> -> vector<16x4xf32>
    %c0_4 = arith.constant 0 : index
    %c0_5 = arith.constant 0 : index
    %c0_6 = arith.constant 0 : index
    %6 = vector.load %arg4[%c0_4, %c0_5, %c0_6] : memref<1x16x4xf32, #tpu.memory_space<vmem>>, vector<1x16x4xf32>
    %7 = vector.shape_cast %6 : vector<1x16x4xf32> to vector<16x4xf32>
    %8 = vector.shape_cast %5 : vector<16x4xf32> to vector<1x16x4xf32>
    tpu.vector_store %arg4[%c0_4, %c0_5, %c0_6], %8 {strides = array<i32>} : memref<1x16x4xf32, #tpu.memory_space<vmem>>, vector<1x16x4xf32>,
    %9 = arith.subf %3, %5 : vector<16x4xf32>
    %c0_7 = arith.constant 0 : index
    %c0_8 = arith.constant 0 : index
    %c0_9 = arith.constant 0 : index
    %10 = vector.load %arg3[%c0_7, %c0_8, %c0_9] : memref<1x16x4xf32, #tpu.memory_space<vmem>>, vector<1x16x4xf32>
    %11 = vector.shape_cast %10 : vector<1x16x4xf32> to vector<16x4xf32>
    %12 = vector.shape_cast %9 : vector<16x4xf32> to vector<1x16x4xf32>
    tpu.vector_store %arg3[%c0_7, %c0_8, %c0_9], %12 {strides = array<i32>} : memref<1x16x4xf32, #tpu.memory_space<vmem>>, vector<1x16x4xf32>,
    return
  }
  func.func @transform_0(%arg0: i32) -> (i32, i32) {
    %c0_i32 = arith.constant 0 : i32
    %c0_i32_0 = arith.constant 0 : i32
    %c0_i32_1 = arith.constant 0 : i32
    return %c0_i32, %c0_i32_0 : i32, i32
  }
  func.func @transform_1(%arg0: i32) -> (i32, i32, i32) {
    %c0_i32 = arith.constant 0 : i32
    %c0_i32_0 = arith.constant 0 : i32
    %c0_i32_1 = arith.constant 0 : i32
    return %arg0, %c0_i32, %c0_i32_0 : i32, i32, i32
  }
  func.func @transform_2(%arg0: i32) -> (i32, i32, i32) {
    %c0_i32 = arith.constant 0 : i32
    %c0_i32_0 = arith.constant 0 : i32
    %c0_i32_1 = arith.constant 0 : i32
    return %arg0, %c0_i32, %c0_i32_0 : i32, i32, i32
  }
  func.func @transform_3(%arg0: i32) -> (i32, i32, i32) {
    %c0_i32 = arith.constant 0 : i32
    %c0_i32_0 = arith.constant 0 : i32
    %c0_i32_1 = arith.constant 0 : i32
    return %arg0, %c0_i32, %c0_i32_0 : i32, i32, i32
  }
}

module attributes {stable_mosaic.version = 11 : i64} {
  func.func @_delay_agg_kernel(%arg0: i32, %arg1: memref<1x32x16xf32, #tpu.memory_space<vmem>>, %arg2: memref<1x16x16xf32, #tpu.memory_space<vmem>>, %arg3: memref<1x32x16xf32, #tpu.memory_space<vmem>>) attributes {dimension_semantics = [#tpu.dimension_semantics<parallel>], iteration_bounds = array<i64: 2>, scalar_prefetch = 0 : i64, scratch_operands = 0 : i64, tpu.core_type = #tpu.core_type<tc>, window_params = [{transform_indices = @transform_0, window_bounds = array<i64: 1, 32, 16>}, {transform_indices = @transform_1, window_bounds = array<i64: 1, 16, 16>}, {transform_indices = @transform_2, window_bounds = array<i64: 1, 32, 16>}]} {
    %c0 = arith.constant 0 : index
    %c0_0 = arith.constant 0 : index
    %c0_1 = arith.constant 0 : index
    %0 = vector.load %arg1[%c0, %c0_0, %c0_1] : memref<1x32x16xf32, #tpu.memory_space<vmem>>, vector<1x32x16xf32>
    %1 = vector.shape_cast %0 : vector<1x32x16xf32> to vector<32x16xf32>
    %2 = arith.truncf %1 : vector<32x16xf32> to vector<32x16xbf16>
    %c0_2 = arith.constant 0 : index
    %c0_3 = arith.constant 0 : index
    %c0_4 = arith.constant 0 : index
    %3 = vector.load %arg2[%c0_2, %c0_3, %c0_4] : memref<1x16x16xf32, #tpu.memory_space<vmem>>, vector<1x16x16xf32>
    %4 = vector.shape_cast %3 : vector<1x16x16xf32> to vector<16x16xf32>
    %5 = arith.truncf %4 : vector<16x16xf32> to vector<16x16xbf16>
    %cst = arith.constant dense<0.000000e+00> : vector<32x16xf32>
    %6 = tpu.matmul %2, %5, %cst {dimension_numbers = #tpu.dot_dimension_numbers<[1], [0], [0], [1], [0, 0, 1, 1], [], []>} : vector<32x16xbf16>, vector<16x16xbf16>, vector<32x16xf32> -> vector<32x16xf32>
    %c0_5 = arith.constant 0 : index
    %c0_6 = arith.constant 0 : index
    %c0_7 = arith.constant 0 : index
    %7 = vector.load %arg3[%c0_5, %c0_6, %c0_7] : memref<1x32x16xf32, #tpu.memory_space<vmem>>, vector<1x32x16xf32>
    %8 = vector.shape_cast %7 : vector<1x32x16xf32> to vector<32x16xf32>
    %9 = vector.shape_cast %6 : vector<32x16xf32> to vector<1x32x16xf32>
    tpu.vector_store %arg3[%c0_5, %c0_6, %c0_7], %9 {strides = array<i32>} : memref<1x32x16xf32, #tpu.memory_space<vmem>>, vector<1x32x16xf32>,
    return
  }
  func.func @transform_0(%arg0: i32) -> (i32, i32, i32) {
    %c0_i32 = arith.constant 0 : i32
    %c0_i32_0 = arith.constant 0 : i32
    %c0_i32_1 = arith.constant 0 : i32
    return %arg0, %c0_i32, %c0_i32_0 : i32, i32, i32
  }
  func.func @transform_1(%arg0: i32) -> (i32, i32, i32) {
    %c0_i32 = arith.constant 0 : i32
    %c0_i32_0 = arith.constant 0 : i32
    %c0_i32_1 = arith.constant 0 : i32
    return %arg0, %c0_i32, %c0_i32_0 : i32, i32, i32
  }
  func.func @transform_2(%arg0: i32) -> (i32, i32, i32) {
    %c0_i32 = arith.constant 0 : i32
    %c0_i32_0 = arith.constant 0 : i32
    %c0_i32_1 = arith.constant 0 : i32
    return %arg0, %c0_i32, %c0_i32_0 : i32, i32, i32
  }
}

module attributes {stable_mosaic.version = 11 : i64} {
  func.func @_decomp_kernel(%arg0: i32, %arg1: memref<16x16xf32, #tpu.memory_space<vmem>>, %arg2: memref<1x16x32xf32, #tpu.memory_space<vmem>>, %arg3: memref<1x16x32xf32, #tpu.memory_space<vmem>>, %arg4: memref<1x16x32xf32, #tpu.memory_space<vmem>>) attributes {dimension_semantics = [#tpu.dimension_semantics<parallel>], iteration_bounds = array<i64: 2>, scalar_prefetch = 0 : i64, scratch_operands = 0 : i64, tpu.core_type = #tpu.core_type<tc>, window_params = [{pipeline_mode = #tpu.pipeline_mode<synchronous>, transform_indices = @transform_0, window_bounds = array<i64: 16, 16>}, {transform_indices = @transform_1, window_bounds = array<i64: 1, 16, 32>}, {transform_indices = @transform_2, window_bounds = array<i64: 1, 16, 32>}, {transform_indices = @transform_3, window_bounds = array<i64: 1, 16, 32>}]} {
    %c0 = arith.constant 0 : index
    %c0_0 = arith.constant 0 : index
    %0 = vector.load %arg1[%c0, %c0_0] : memref<16x16xf32, #tpu.memory_space<vmem>>, vector<16x16xf32>
    %1 = arith.truncf %0 : vector<16x16xf32> to vector<16x16xbf16>
    %c0_1 = arith.constant 0 : index
    %c0_2 = arith.constant 0 : index
    %c0_3 = arith.constant 0 : index
    %2 = vector.load %arg2[%c0_1, %c0_2, %c0_3] : memref<1x16x32xf32, #tpu.memory_space<vmem>>, vector<1x16x32xf32>
    %3 = vector.shape_cast %2 : vector<1x16x32xf32> to vector<16x32xf32>
    %4 = arith.truncf %3 : vector<16x32xf32> to vector<16x32xbf16>
    %cst = arith.constant dense<0.000000e+00> : vector<16x32xf32>
    %5 = tpu.matmul %1, %4, %cst {dimension_numbers = #tpu.dot_dimension_numbers<[1], [0], [0], [1], [0, 0, 1, 1], [], []>} : vector<16x16xbf16>, vector<16x32xbf16>, vector<16x32xf32> -> vector<16x32xf32>
    %c0_4 = arith.constant 0 : index
    %c0_5 = arith.constant 0 : index
    %c0_6 = arith.constant 0 : index
    %6 = vector.load %arg4[%c0_4, %c0_5, %c0_6] : memref<1x16x32xf32, #tpu.memory_space<vmem>>, vector<1x16x32xf32>
    %7 = vector.shape_cast %6 : vector<1x16x32xf32> to vector<16x32xf32>
    %8 = vector.shape_cast %5 : vector<16x32xf32> to vector<1x16x32xf32>
    tpu.vector_store %arg4[%c0_4, %c0_5, %c0_6], %8 {strides = array<i32>} : memref<1x16x32xf32, #tpu.memory_space<vmem>>, vector<1x16x32xf32>,
    %9 = arith.subf %3, %5 : vector<16x32xf32>
    %c0_7 = arith.constant 0 : index
    %c0_8 = arith.constant 0 : index
    %c0_9 = arith.constant 0 : index
    %10 = vector.load %arg3[%c0_7, %c0_8, %c0_9] : memref<1x16x32xf32, #tpu.memory_space<vmem>>, vector<1x16x32xf32>
    %11 = vector.shape_cast %10 : vector<1x16x32xf32> to vector<16x32xf32>
    %12 = vector.shape_cast %9 : vector<16x32xf32> to vector<1x16x32xf32>
    tpu.vector_store %arg3[%c0_7, %c0_8, %c0_9], %12 {strides = array<i32>} : memref<1x16x32xf32, #tpu.memory_space<vmem>>, vector<1x16x32xf32>,
    return
  }
  func.func @transform_0(%arg0: i32) -> (i32, i32) {
    %c0_i32 = arith.constant 0 : i32
    %c0_i32_0 = arith.constant 0 : i32
    %c0_i32_1 = arith.constant 0 : i32
    return %c0_i32, %c0_i32_0 : i32, i32
  }
  func.func @transform_1(%arg0: i32) -> (i32, i32, i32) {
    %c0_i32 = arith.constant 0 : i32
    %c0_i32_0 = arith.constant 0 : i32
    %c0_i32_1 = arith.constant 0 : i32
    return %arg0, %c0_i32, %c0_i32_0 : i32, i32, i32
  }
  func.func @transform_2(%arg0: i32) -> (i32, i32, i32) {
    %c0_i32 = arith.constant 0 : i32
    %c0_i32_0 = arith.constant 0 : i32
    %c0_i32_1 = arith.constant 0 : i32
    return %arg0, %c0_i32, %c0_i32_0 : i32, i32, i32
  }
  func.func @transform_3(%arg0: i32) -> (i32, i32, i32) {
    %c0_i32 = arith.constant 0 : i32
    %c0_i32_0 = arith.constant 0 : i32
    %c0_i32_1 = arith.constant 0 : i32
    return %arg0, %c0_i32, %c0_i32_0 : i32, i32, i32
  }
}

module attributes {stable_mosaic.version = 11 : i64} {
  func.func @_mm_kernel(%arg0: i32, %arg1: i32, %arg2: memref<32x32xf32, #tpu.memory_space<vmem>>, %arg3: memref<32x32xbf16, #tpu.memory_space<vmem>>, %arg4: memref<1x32xf32, #tpu.memory_space<vmem>>, %arg5: memref<32x32xf32, #tpu.memory_space<vmem>>, %arg6: memref<32x32xf32, #tpu.memory_space<vmem>>, %arg7: memref<32x32xf32, #tpu.memory_space<vmem>>) attributes {dimension_semantics = [#tpu.dimension_semantics<parallel>, #tpu.dimension_semantics<arbitrary>], iteration_bounds = array<i64: 1, 1>, scalar_prefetch = 0 : i64, scratch_operands = 1 : i64, tpu.core_type = #tpu.core_type<tc>, window_params = [{transform_indices = @transform_0, window_bounds = array<i64: 32, 32>}, {transform_indices = @transform_1, window_bounds = array<i64: 32, 32>}, {pipeline_mode = #tpu.pipeline_mode<synchronous>, transform_indices = @transform_2, window_bounds = array<i64: 1, 32>}, {transform_indices = @transform_3, window_bounds = array<i64: 32, 32>}, {transform_indices = @transform_4, window_bounds = array<i64: 32, 32>}]} {
    %c0_i32 = arith.constant 0 : i32
    %0 = arith.cmpi eq, %arg1, %c0_i32 : i32
    %1 = arith.extui %0 : i1 to i32
    %c0_i32_0 = arith.constant 0 : i32
    %2 = arith.cmpi ne, %1, %c0_i32_0 : i32
    scf.if %2 {
      %cst_10 = arith.constant 0.000000e+00 : f32
      %13 = vector.broadcast %cst_10 : f32 to vector<32x32xf32>
      %c0_11 = arith.constant 0 : index
      %c0_12 = arith.constant 0 : index
      %14 = vector.load %arg7[%c0_11, %c0_12] : memref<32x32xf32, #tpu.memory_space<vmem>>, vector<32x32xf32>
      tpu.vector_store %arg7[%c0_11, %c0_12], %13 {strides = array<i32>} : memref<32x32xf32, #tpu.memory_space<vmem>>, vector<32x32xf32>,
    } else {
    }
    %c0 = arith.constant 0 : index
    %c0_1 = arith.constant 0 : index
    %3 = vector.load %arg7[%c0, %c0_1] : memref<32x32xf32, #tpu.memory_space<vmem>>, vector<32x32xf32>
    %c0_2 = arith.constant 0 : index
    %c0_3 = arith.constant 0 : index
    %4 = vector.load %arg2[%c0_2, %c0_3] : memref<32x32xf32, #tpu.memory_space<vmem>>, vector<32x32xf32>
    %5 = arith.truncf %4 : vector<32x32xf32> to vector<32x32xbf16>
    %c0_4 = arith.constant 0 : index
    %c0_5 = arith.constant 0 : index
    %6 = vector.load %arg3[%c0_4, %c0_5] : memref<32x32xbf16, #tpu.memory_space<vmem>>, vector<32x32xbf16>
    %cst = arith.constant dense<0.000000e+00> : vector<32x32xf32>
    %7 = tpu.matmul %5, %6, %cst {dimension_numbers = #tpu.dot_dimension_numbers<[1], [0], [0], [1], [0, 0, 1, 1], [], []>} : vector<32x32xbf16>, vector<32x32xbf16>, vector<32x32xf32> -> vector<32x32xf32>
    %8 = arith.addf %3, %7 : vector<32x32xf32>
    %c0_6 = arith.constant 0 : index
    %c0_7 = arith.constant 0 : index
    %9 = vector.load %arg7[%c0_6, %c0_7] : memref<32x32xf32, #tpu.memory_space<vmem>>, vector<32x32xf32>
    tpu.vector_store %arg7[%c0_6, %c0_7], %8 {strides = array<i32>} : memref<32x32xf32, #tpu.memory_space<vmem>>, vector<32x32xf32>,
    %c0_i32_8 = arith.constant 0 : i32
    %10 = arith.cmpi eq, %arg1, %c0_i32_8 : i32
    %11 = arith.extui %10 : i1 to i32
    %c0_i32_9 = arith.constant 0 : i32
    %12 = arith.cmpi ne, %11, %c0_i32_9 : i32
    scf.if %12 {
      %c0_10 = arith.constant 0 : index
      %c0_11 = arith.constant 0 : index
      %13 = vector.load %arg7[%c0_10, %c0_11] : memref<32x32xf32, #tpu.memory_space<vmem>>, vector<32x32xf32>
      %c0_12 = arith.constant 0 : index
      %c0_13 = arith.constant 0 : index
      %14 = vector.load %arg4[%c0_12, %c0_13] : memref<1x32xf32, #tpu.memory_space<vmem>>, vector<1x32xf32>
      %15 = vector.broadcast %14 : vector<1x32xf32> to vector<32x32xf32>
      %16 = arith.addf %13, %15 : vector<32x32xf32>
      %c0_14 = arith.constant 0 : index
      %c0_15 = arith.constant 0 : index
      %17 = vector.load %arg5[%c0_14, %c0_15] : memref<32x32xf32, #tpu.memory_space<vmem>>, vector<32x32xf32>
      %18 = arith.addf %16, %17 : vector<32x32xf32>
      %c0_16 = arith.constant 0 : index
      %c0_17 = arith.constant 0 : index
      %19 = vector.load %arg6[%c0_16, %c0_17] : memref<32x32xf32, #tpu.memory_space<vmem>>, vector<32x32xf32>
      tpu.vector_store %arg6[%c0_16, %c0_17], %18 {strides = array<i32>} : memref<32x32xf32, #tpu.memory_space<vmem>>, vector<32x32xf32>,
    } else {
    }
    return
  }
  func.func @transform_0(%arg0: i32, %arg1: i32) -> (i32, i32) {
    %c0_i32 = arith.constant 0 : i32
    return %arg0, %arg1 : i32, i32
  }
  func.func @transform_1(%arg0: i32, %arg1: i32) -> (i32, i32) {
    %c0_i32 = arith.constant 0 : i32
    %c0_i32_0 = arith.constant 0 : i32
    return %arg1, %c0_i32 : i32, i32
  }
  func.func @transform_2(%arg0: i32, %arg1: i32) -> (i32, i32) {
    %c0_i32 = arith.constant 0 : i32
    %c0_i32_0 = arith.constant 0 : i32
    %c0_i32_1 = arith.constant 0 : i32
    return %c0_i32, %c0_i32_0 : i32, i32
  }
  func.func @transform_3(%arg0: i32, %arg1: i32) -> (i32, i32) {
    %c0_i32 = arith.constant 0 : i32
    %c0_i32_0 = arith.constant 0 : i32
    return %arg0, %c0_i32 : i32, i32
  }
  func.func @transform_4(%arg0: i32, %arg1: i32) -> (i32, i32) {
    %c0_i32 = arith.constant 0 : i32
    %c0_i32_0 = arith.constant 0 : i32
    return %arg0, %c0_i32 : i32, i32
  }
}

module attributes {stable_mosaic.version = 11 : i64} {
  func.func @_mm_kernel(%arg0: i32, %arg1: i32, %arg2: memref<32x32xf32, #tpu.memory_space<vmem>>, %arg3: memref<32x32xbf16, #tpu.memory_space<vmem>>, %arg4: memref<1x32xf32, #tpu.memory_space<vmem>>, %arg5: memref<32x32xf32, #tpu.memory_space<vmem>>, %arg6: memref<32x32xf32, #tpu.memory_space<vmem>>) attributes {dimension_semantics = [#tpu.dimension_semantics<parallel>, #tpu.dimension_semantics<arbitrary>], iteration_bounds = array<i64: 1, 1>, scalar_prefetch = 0 : i64, scratch_operands = 1 : i64, tpu.core_type = #tpu.core_type<tc>, window_params = [{transform_indices = @transform_0, window_bounds = array<i64: 32, 32>}, {transform_indices = @transform_1, window_bounds = array<i64: 32, 32>}, {pipeline_mode = #tpu.pipeline_mode<synchronous>, transform_indices = @transform_2, window_bounds = array<i64: 1, 32>}, {transform_indices = @transform_3, window_bounds = array<i64: 32, 32>}]} {
    %c0_i32 = arith.constant 0 : i32
    %0 = arith.cmpi eq, %arg1, %c0_i32 : i32
    %1 = arith.extui %0 : i1 to i32
    %c0_i32_0 = arith.constant 0 : i32
    %2 = arith.cmpi ne, %1, %c0_i32_0 : i32
    scf.if %2 {
      %cst_10 = arith.constant 0.000000e+00 : f32
      %13 = vector.broadcast %cst_10 : f32 to vector<32x32xf32>
      %c0_11 = arith.constant 0 : index
      %c0_12 = arith.constant 0 : index
      %14 = vector.load %arg6[%c0_11, %c0_12] : memref<32x32xf32, #tpu.memory_space<vmem>>, vector<32x32xf32>
      tpu.vector_store %arg6[%c0_11, %c0_12], %13 {strides = array<i32>} : memref<32x32xf32, #tpu.memory_space<vmem>>, vector<32x32xf32>,
    } else {
    }
    %c0 = arith.constant 0 : index
    %c0_1 = arith.constant 0 : index
    %3 = vector.load %arg6[%c0, %c0_1] : memref<32x32xf32, #tpu.memory_space<vmem>>, vector<32x32xf32>
    %c0_2 = arith.constant 0 : index
    %c0_3 = arith.constant 0 : index
    %4 = vector.load %arg2[%c0_2, %c0_3] : memref<32x32xf32, #tpu.memory_space<vmem>>, vector<32x32xf32>
    %5 = arith.truncf %4 : vector<32x32xf32> to vector<32x32xbf16>
    %c0_4 = arith.constant 0 : index
    %c0_5 = arith.constant 0 : index
    %6 = vector.load %arg3[%c0_4, %c0_5] : memref<32x32xbf16, #tpu.memory_space<vmem>>, vector<32x32xbf16>
    %cst = arith.constant dense<0.000000e+00> : vector<32x32xf32>
    %7 = tpu.matmul %5, %6, %cst {dimension_numbers = #tpu.dot_dimension_numbers<[1], [0], [0], [1], [0, 0, 1, 1], [], []>} : vector<32x32xbf16>, vector<32x32xbf16>, vector<32x32xf32> -> vector<32x32xf32>
    %8 = arith.addf %3, %7 : vector<32x32xf32>
    %c0_6 = arith.constant 0 : index
    %c0_7 = arith.constant 0 : index
    %9 = vector.load %arg6[%c0_6, %c0_7] : memref<32x32xf32, #tpu.memory_space<vmem>>, vector<32x32xf32>
    tpu.vector_store %arg6[%c0_6, %c0_7], %8 {strides = array<i32>} : memref<32x32xf32, #tpu.memory_space<vmem>>, vector<32x32xf32>,
    %c0_i32_8 = arith.constant 0 : i32
    %10 = arith.cmpi eq, %arg1, %c0_i32_8 : i32
    %11 = arith.extui %10 : i1 to i32
    %c0_i32_9 = arith.constant 0 : i32
    %12 = arith.cmpi ne, %11, %c0_i32_9 : i32
    scf.if %12 {
      %c0_10 = arith.constant 0 : index
      %c0_11 = arith.constant 0 : index
      %13 = vector.load %arg6[%c0_10, %c0_11] : memref<32x32xf32, #tpu.memory_space<vmem>>, vector<32x32xf32>
      %c0_12 = arith.constant 0 : index
      %c0_13 = arith.constant 0 : index
      %14 = vector.load %arg4[%c0_12, %c0_13] : memref<1x32xf32, #tpu.memory_space<vmem>>, vector<1x32xf32>
      %15 = vector.broadcast %14 : vector<1x32xf32> to vector<32x32xf32>
      %16 = arith.addf %13, %15 : vector<32x32xf32>
      %c0_14 = arith.constant 0 : index
      %c0_15 = arith.constant 0 : index
      %17 = vector.load %arg5[%c0_14, %c0_15] : memref<32x32xf32, #tpu.memory_space<vmem>>, vector<32x32xf32>
      tpu.vector_store %arg5[%c0_14, %c0_15], %16 {strides = array<i32>} : memref<32x32xf32, #tpu.memory_space<vmem>>, vector<32x32xf32>,
    } else {
    }
    return
  }
  func.func @transform_0(%arg0: i32, %arg1: i32) -> (i32, i32) {
    %c0_i32 = arith.constant 0 : i32
    return %arg0, %arg1 : i32, i32
  }
  func.func @transform_1(%arg0: i32, %arg1: i32) -> (i32, i32) {
    %c0_i32 = arith.constant 0 : i32
    %c0_i32_0 = arith.constant 0 : i32
    return %arg1, %c0_i32 : i32, i32
  }
  func.func @transform_2(%arg0: i32, %arg1: i32) -> (i32, i32) {
    %c0_i32 = arith.constant 0 : i32
    %c0_i32_0 = arith.constant 0 : i32
    %c0_i32_1 = arith.constant 0 : i32
    return %c0_i32, %c0_i32_0 : i32, i32
  }
  func.func @transform_3(%arg0: i32, %arg1: i32) -> (i32, i32) {
    %c0_i32 = arith.constant 0 : i32
    %c0_i32_0 = arith.constant 0 : i32
    return %arg0, %c0_i32 : i32, i32
  }
}

module attributes {stable_mosaic.version = 11 : i64} {
  func.func @_decomp_kernel(%arg0: i32, %arg1: memref<16x16xf32, #tpu.memory_space<vmem>>, %arg2: memref<1x16x32xf32, #tpu.memory_space<vmem>>, %arg3: memref<1x16x32xf32, #tpu.memory_space<vmem>>, %arg4: memref<1x16x32xf32, #tpu.memory_space<vmem>>) attributes {dimension_semantics = [#tpu.dimension_semantics<parallel>], iteration_bounds = array<i64: 2>, scalar_prefetch = 0 : i64, scratch_operands = 0 : i64, tpu.core_type = #tpu.core_type<tc>, window_params = [{pipeline_mode = #tpu.pipeline_mode<synchronous>, transform_indices = @transform_0, window_bounds = array<i64: 16, 16>}, {transform_indices = @transform_1, window_bounds = array<i64: 1, 16, 32>}, {transform_indices = @transform_2, window_bounds = array<i64: 1, 16, 32>}, {transform_indices = @transform_3, window_bounds = array<i64: 1, 16, 32>}]} {
    %c0 = arith.constant 0 : index
    %c0_0 = arith.constant 0 : index
    %0 = vector.load %arg1[%c0, %c0_0] : memref<16x16xf32, #tpu.memory_space<vmem>>, vector<16x16xf32>
    %1 = arith.truncf %0 : vector<16x16xf32> to vector<16x16xbf16>
    %c0_1 = arith.constant 0 : index
    %c0_2 = arith.constant 0 : index
    %c0_3 = arith.constant 0 : index
    %2 = vector.load %arg2[%c0_1, %c0_2, %c0_3] : memref<1x16x32xf32, #tpu.memory_space<vmem>>, vector<1x16x32xf32>
    %3 = vector.shape_cast %2 : vector<1x16x32xf32> to vector<16x32xf32>
    %4 = arith.truncf %3 : vector<16x32xf32> to vector<16x32xbf16>
    %cst = arith.constant dense<0.000000e+00> : vector<16x32xf32>
    %5 = tpu.matmul %1, %4, %cst {dimension_numbers = #tpu.dot_dimension_numbers<[1], [0], [0], [1], [0, 0, 1, 1], [], []>} : vector<16x16xbf16>, vector<16x32xbf16>, vector<16x32xf32> -> vector<16x32xf32>
    %c0_4 = arith.constant 0 : index
    %c0_5 = arith.constant 0 : index
    %c0_6 = arith.constant 0 : index
    %6 = vector.load %arg4[%c0_4, %c0_5, %c0_6] : memref<1x16x32xf32, #tpu.memory_space<vmem>>, vector<1x16x32xf32>
    %7 = vector.shape_cast %6 : vector<1x16x32xf32> to vector<16x32xf32>
    %8 = vector.shape_cast %5 : vector<16x32xf32> to vector<1x16x32xf32>
    tpu.vector_store %arg4[%c0_4, %c0_5, %c0_6], %8 {strides = array<i32>} : memref<1x16x32xf32, #tpu.memory_space<vmem>>, vector<1x16x32xf32>,
    %9 = arith.subf %3, %5 : vector<16x32xf32>
    %c0_7 = arith.constant 0 : index
    %c0_8 = arith.constant 0 : index
    %c0_9 = arith.constant 0 : index
    %10 = vector.load %arg3[%c0_7, %c0_8, %c0_9] : memref<1x16x32xf32, #tpu.memory_space<vmem>>, vector<1x16x32xf32>
    %11 = vector.shape_cast %10 : vector<1x16x32xf32> to vector<16x32xf32>
    %12 = vector.shape_cast %9 : vector<16x32xf32> to vector<1x16x32xf32>
    tpu.vector_store %arg3[%c0_7, %c0_8, %c0_9], %12 {strides = array<i32>} : memref<1x16x32xf32, #tpu.memory_space<vmem>>, vector<1x16x32xf32>,
    return
  }
  func.func @transform_0(%arg0: i32) -> (i32, i32) {
    %c0_i32 = arith.constant 0 : i32
    %c0_i32_0 = arith.constant 0 : i32
    %c0_i32_1 = arith.constant 0 : i32
    return %c0_i32, %c0_i32_0 : i32, i32
  }
  func.func @transform_1(%arg0: i32) -> (i32, i32, i32) {
    %c0_i32 = arith.constant 0 : i32
    %c0_i32_0 = arith.constant 0 : i32
    %c0_i32_1 = arith.constant 0 : i32
    return %arg0, %c0_i32, %c0_i32_0 : i32, i32, i32
  }
  func.func @transform_2(%arg0: i32) -> (i32, i32, i32) {
    %c0_i32 = arith.constant 0 : i32
    %c0_i32_0 = arith.constant 0 : i32
    %c0_i32_1 = arith.constant 0 : i32
    return %arg0, %c0_i32, %c0_i32_0 : i32, i32, i32
  }
  func.func @transform_3(%arg0: i32) -> (i32, i32, i32) {
    %c0_i32 = arith.constant 0 : i32
    %c0_i32_0 = arith.constant 0 : i32
    %c0_i32_1 = arith.constant 0 : i32
    return %arg0, %c0_i32, %c0_i32_0 : i32, i32, i32
  }
}

module attributes {stable_mosaic.version = 11 : i64} {
  func.func @_ffn_kernel(%arg0: i32, %arg1: memref<32x32xf32, #tpu.memory_space<vmem>>, %arg2: memref<32x64xbf16, #tpu.memory_space<vmem>>, %arg3: memref<64x32xbf16, #tpu.memory_space<vmem>>, %arg4: memref<32x32xf32, #tpu.memory_space<vmem>>) attributes {dimension_semantics = [#tpu.dimension_semantics<parallel>], iteration_bounds = array<i64: 1>, scalar_prefetch = 0 : i64, scratch_operands = 0 : i64, tpu.core_type = #tpu.core_type<tc>, window_params = [{transform_indices = @transform_0, window_bounds = array<i64: 32, 32>}, {pipeline_mode = #tpu.pipeline_mode<synchronous>, transform_indices = @transform_1, window_bounds = array<i64: 32, 64>}, {pipeline_mode = #tpu.pipeline_mode<synchronous>, transform_indices = @transform_2, window_bounds = array<i64: 64, 32>}, {transform_indices = @transform_3, window_bounds = array<i64: 32, 32>}]} {
    %c0 = arith.constant 0 : index
    %c0_0 = arith.constant 0 : index
    %0 = vector.load %arg1[%c0, %c0_0] : memref<32x32xf32, #tpu.memory_space<vmem>>, vector<32x32xf32>
    %1 = arith.truncf %0 : vector<32x32xf32> to vector<32x32xbf16>
    %c0_1 = arith.constant 0 : index
    %c0_2 = arith.constant 0 : index
    %2 = vector.load %arg2[%c0_1, %c0_2] : memref<32x64xbf16, #tpu.memory_space<vmem>>, vector<32x64xbf16>
    %cst = arith.constant dense<0.000000e+00> : vector<32x64xf32>
    %3 = tpu.matmul %1, %2, %cst {dimension_numbers = #tpu.dot_dimension_numbers<[1], [0], [0], [1], [0, 0, 1, 1], [], []>} : vector<32x32xbf16>, vector<32x64xbf16>, vector<32x64xf32> -> vector<32x64xf32>
    %cst_3 = arith.constant 0.000000e+00 : f32
    %4 = vector.broadcast %cst_3 : f32 to vector<32x64xf32>
    %5 = arith.maximumf %3, %4 : vector<32x64xf32>
    %6 = arith.truncf %5 : vector<32x64xf32> to vector<32x64xbf16>
    %c0_4 = arith.constant 0 : index
    %c0_5 = arith.constant 0 : index
    %7 = vector.load %arg3[%c0_4, %c0_5] : memref<64x32xbf16, #tpu.memory_space<vmem>>, vector<64x32xbf16>
    %cst_6 = arith.constant dense<0.000000e+00> : vector<32x32xf32>
    %8 = tpu.matmul %6, %7, %cst_6 {dimension_numbers = #tpu.dot_dimension_numbers<[1], [0], [0], [1], [0, 0, 1, 1], [], []>} : vector<32x64xbf16>, vector<64x32xbf16>, vector<32x32xf32> -> vector<32x32xf32>
    %c0_7 = arith.constant 0 : index
    %c0_8 = arith.constant 0 : index
    %9 = vector.load %arg1[%c0_7, %c0_8] : memref<32x32xf32, #tpu.memory_space<vmem>>, vector<32x32xf32>
    %10 = arith.addf %9, %8 : vector<32x32xf32>
    %c0_9 = arith.constant 0 : index
    %c0_10 = arith.constant 0 : index
    %11 = vector.load %arg4[%c0_9, %c0_10] : memref<32x32xf32, #tpu.memory_space<vmem>>, vector<32x32xf32>
    tpu.vector_store %arg4[%c0_9, %c0_10], %10 {strides = array<i32>} : memref<32x32xf32, #tpu.memory_space<vmem>>, vector<32x32xf32>,
    return
  }
  func.func @transform_0(%arg0: i32) -> (i32, i32) {
    %c0_i32 = arith.constant 0 : i32
    %c0_i32_0 = arith.constant 0 : i32
    return %arg0, %c0_i32 : i32, i32
  }
  func.func @transform_1(%arg0: i32) -> (i32, i32) {
    %c0_i32 = arith.constant 0 : i32
    %c0_i32_0 = arith.constant 0 : i32
    %c0_i32_1 = arith.constant 0 : i32
    return %c0_i32, %c0_i32_0 : i32, i32
  }
  func.func @transform_2(%arg0: i32) -> (i32, i32) {
    %c0_i32 = arith.constant 0 : i32
    %c0_i32_0 = arith.constant 0 : i32
    %c0_i32_1 = arith.constant 0 : i32
    return %c0_i32, %c0_i32_0 : i32, i32
  }
  func.func @transform_3(%arg0: i32) -> (i32, i32) {
    %c0_i32 = arith.constant 0 : i32
    %c0_i32_0 = arith.constant 0 : i32
    return %arg0, %c0_i32 : i32, i32
  }
}

module attributes {stable_mosaic.version = 11 : i64} {
  func.func @_mm_kernel(%arg0: i32, %arg1: i32, %arg2: memref<32x32xf32, #tpu.memory_space<vmem>>, %arg3: memref<32x64xbf16, #tpu.memory_space<vmem>>, %arg4: memref<1x64xf32, #tpu.memory_space<vmem>>, %arg5: memref<32x64xf32, #tpu.memory_space<vmem>>, %arg6: memref<32x64xf32, #tpu.memory_space<vmem>>) attributes {dimension_semantics = [#tpu.dimension_semantics<parallel>, #tpu.dimension_semantics<arbitrary>], iteration_bounds = array<i64: 1, 1>, scalar_prefetch = 0 : i64, scratch_operands = 1 : i64, tpu.core_type = #tpu.core_type<tc>, window_params = [{transform_indices = @transform_0, window_bounds = array<i64: 32, 32>}, {transform_indices = @transform_1, window_bounds = array<i64: 32, 64>}, {pipeline_mode = #tpu.pipeline_mode<synchronous>, transform_indices = @transform_2, window_bounds = array<i64: 1, 64>}, {transform_indices = @transform_3, window_bounds = array<i64: 32, 64>}]} {
    %c0_i32 = arith.constant 0 : i32
    %0 = arith.cmpi eq, %arg1, %c0_i32 : i32
    %1 = arith.extui %0 : i1 to i32
    %c0_i32_0 = arith.constant 0 : i32
    %2 = arith.cmpi ne, %1, %c0_i32_0 : i32
    scf.if %2 {
      %cst_10 = arith.constant 0.000000e+00 : f32
      %13 = vector.broadcast %cst_10 : f32 to vector<32x64xf32>
      %c0_11 = arith.constant 0 : index
      %c0_12 = arith.constant 0 : index
      %14 = vector.load %arg6[%c0_11, %c0_12] : memref<32x64xf32, #tpu.memory_space<vmem>>, vector<32x64xf32>
      tpu.vector_store %arg6[%c0_11, %c0_12], %13 {strides = array<i32>} : memref<32x64xf32, #tpu.memory_space<vmem>>, vector<32x64xf32>,
    } else {
    }
    %c0 = arith.constant 0 : index
    %c0_1 = arith.constant 0 : index
    %3 = vector.load %arg6[%c0, %c0_1] : memref<32x64xf32, #tpu.memory_space<vmem>>, vector<32x64xf32>
    %c0_2 = arith.constant 0 : index
    %c0_3 = arith.constant 0 : index
    %4 = vector.load %arg2[%c0_2, %c0_3] : memref<32x32xf32, #tpu.memory_space<vmem>>, vector<32x32xf32>
    %5 = arith.truncf %4 : vector<32x32xf32> to vector<32x32xbf16>
    %c0_4 = arith.constant 0 : index
    %c0_5 = arith.constant 0 : index
    %6 = vector.load %arg3[%c0_4, %c0_5] : memref<32x64xbf16, #tpu.memory_space<vmem>>, vector<32x64xbf16>
    %cst = arith.constant dense<0.000000e+00> : vector<32x64xf32>
    %7 = tpu.matmul %5, %6, %cst {dimension_numbers = #tpu.dot_dimension_numbers<[1], [0], [0], [1], [0, 0, 1, 1], [], []>} : vector<32x32xbf16>, vector<32x64xbf16>, vector<32x64xf32> -> vector<32x64xf32>
    %8 = arith.addf %3, %7 : vector<32x64xf32>
    %c0_6 = arith.constant 0 : index
    %c0_7 = arith.constant 0 : index
    %9 = vector.load %arg6[%c0_6, %c0_7] : memref<32x64xf32, #tpu.memory_space<vmem>>, vector<32x64xf32>
    tpu.vector_store %arg6[%c0_6, %c0_7], %8 {strides = array<i32>} : memref<32x64xf32, #tpu.memory_space<vmem>>, vector<32x64xf32>,
    %c0_i32_8 = arith.constant 0 : i32
    %10 = arith.cmpi eq, %arg1, %c0_i32_8 : i32
    %11 = arith.extui %10 : i1 to i32
    %c0_i32_9 = arith.constant 0 : i32
    %12 = arith.cmpi ne, %11, %c0_i32_9 : i32
    scf.if %12 {
      %c0_10 = arith.constant 0 : index
      %c0_11 = arith.constant 0 : index
      %13 = vector.load %arg6[%c0_10, %c0_11] : memref<32x64xf32, #tpu.memory_space<vmem>>, vector<32x64xf32>
      %c0_12 = arith.constant 0 : index
      %c0_13 = arith.constant 0 : index
      %14 = vector.load %arg4[%c0_12, %c0_13] : memref<1x64xf32, #tpu.memory_space<vmem>>, vector<1x64xf32>
      %15 = vector.broadcast %14 : vector<1x64xf32> to vector<32x64xf32>
      %16 = arith.addf %13, %15 : vector<32x64xf32>
      %c0_14 = arith.constant 0 : index
      %c0_15 = arith.constant 0 : index
      %17 = vector.load %arg5[%c0_14, %c0_15] : memref<32x64xf32, #tpu.memory_space<vmem>>, vector<32x64xf32>
      tpu.vector_store %arg5[%c0_14, %c0_15], %16 {strides = array<i32>} : memref<32x64xf32, #tpu.memory_space<vmem>>, vector<32x64xf32>,
    } else {
    }
    return
  }
  func.func @transform_0(%arg0: i32, %arg1: i32) -> (i32, i32) {
    %c0_i32 = arith.constant 0 : i32
    return %arg0, %arg1 : i32, i32
  }
  func.func @transform_1(%arg0: i32, %arg1: i32) -> (i32, i32) {
    %c0_i32 = arith.constant 0 : i32
    %c0_i32_0 = arith.constant 0 : i32
    return %arg1, %c0_i32 : i32, i32
  }
  func.func @transform_2(%arg0: i32, %arg1: i32) -> (i32, i32) {
    %c0_i32 = arith.constant 0 : i32
    %c0_i32_0 = arith.constant 0 : i32
    %c0_i32_1 = arith.constant 0 : i32
    return %c0_i32, %c0_i32_0 : i32, i32
  }
  func.func @transform_3(%arg0: i32, %arg1: i32) -> (i32, i32) {
    %c0_i32 = arith.constant 0 : i32
    %c0_i32_0 = arith.constant 0 : i32
    return %arg0, %c0_i32 : i32, i32
  }
}

module attributes {stable_mosaic.version = 11 : i64} {
  func.func @_ln_kernel(%arg0: i32, %arg1: memref<1x16x32xf32, #tpu.memory_space<vmem>>, %arg2: memref<1x32xf32, #tpu.memory_space<vmem>>, %arg3: memref<1x32xf32, #tpu.memory_space<vmem>>, %arg4: memref<1x16x32xf32, #tpu.memory_space<vmem>>) attributes {dimension_semantics = [#tpu.dimension_semantics<parallel>], iteration_bounds = array<i64: 2>, scalar_prefetch = 0 : i64, scratch_operands = 0 : i64, tpu.core_type = #tpu.core_type<tc>, window_params = [{transform_indices = @transform_0, window_bounds = array<i64: 1, 16, 32>}, {pipeline_mode = #tpu.pipeline_mode<synchronous>, transform_indices = @transform_1, window_bounds = array<i64: 1, 32>}, {pipeline_mode = #tpu.pipeline_mode<synchronous>, transform_indices = @transform_2, window_bounds = array<i64: 1, 32>}, {transform_indices = @transform_3, window_bounds = array<i64: 1, 16, 32>}]} {
    %c0 = arith.constant 0 : index
    %c0_0 = arith.constant 0 : index
    %c0_1 = arith.constant 0 : index
    %0 = vector.load %arg1[%c0, %c0_0, %c0_1] : memref<1x16x32xf32, #tpu.memory_space<vmem>>, vector<1x16x32xf32>
    %cst = arith.constant dense<0.000000e+00> : vector<1x16xf32>
    %1 = vector.multi_reduction <add>, %0, %cst [2] : vector<1x16x32xf32> to vector<1x16xf32>
    %2 = vector.shape_cast %1 : vector<1x16xf32> to vector<1x16x1xf32>
    %cst_2 = arith.constant 3.200000e+01 : f32
    %3 = vector.broadcast %cst_2 : f32 to vector<1x16x1xf32>
    %4 = arith.divf %2, %3 : vector<1x16x1xf32>
    %5 = vector.broadcast %4 : vector<1x16x1xf32> to vector<1x16x32xf32>
    %6 = arith.subf %0, %5 : vector<1x16x32xf32>
    %7 = arith.mulf %6, %6 : vector<1x16x32xf32>
    %cst_3 = arith.constant dense<0.000000e+00> : vector<1x16xf32>
    %8 = vector.multi_reduction <add>, %7, %cst_3 [2] : vector<1x16x32xf32> to vector<1x16xf32>
    %9 = vector.shape_cast %8 : vector<1x16xf32> to vector<1x16x1xf32>
    %cst_4 = arith.constant 3.200000e+01 : f32
    %10 = vector.broadcast %cst_4 : f32 to vector<1x16x1xf32>
    %11 = arith.divf %9, %10 : vector<1x16x1xf32>
    %12 = vector.broadcast %4 : vector<1x16x1xf32> to vector<1x16x32xf32>
    %13 = arith.subf %0, %12 : vector<1x16x32xf32>
    %cst_5 = arith.constant 9.99999974E-6 : f32
    %14 = vector.broadcast %cst_5 : f32 to vector<1x16x1xf32>
    %15 = arith.addf %11, %14 : vector<1x16x1xf32>
    %16 = math.rsqrt %15 : vector<1x16x1xf32>
    %17 = vector.broadcast %16 : vector<1x16x1xf32> to vector<1x16x32xf32>
    %18 = arith.mulf %13, %17 : vector<1x16x32xf32>
    %c0_6 = arith.constant 0 : index
    %c0_7 = arith.constant 0 : index
    %19 = vector.load %arg2[%c0_6, %c0_7] : memref<1x32xf32, #tpu.memory_space<vmem>>, vector<1x32xf32>
    %20 = vector.shape_cast %19 : vector<1x32xf32> to vector<1x1x32xf32>
    %21 = vector.broadcast %20 : vector<1x1x32xf32> to vector<1x16x32xf32>
    %22 = arith.mulf %18, %21 : vector<1x16x32xf32>
    %c0_8 = arith.constant 0 : index
    %c0_9 = arith.constant 0 : index
    %23 = vector.load %arg3[%c0_8, %c0_9] : memref<1x32xf32, #tpu.memory_space<vmem>>, vector<1x32xf32>
    %24 = vector.shape_cast %23 : vector<1x32xf32> to vector<1x1x32xf32>
    %25 = vector.broadcast %24 : vector<1x1x32xf32> to vector<1x16x32xf32>
    %26 = arith.addf %22, %25 : vector<1x16x32xf32>
    %cst_10 = arith.constant dense<0.000000e+00> : vector<1x32xf32>
    %27 = vector.multi_reduction <add>, %26, %cst_10 [1] : vector<1x16x32xf32> to vector<1x32xf32>
    %28 = vector.shape_cast %27 : vector<1x32xf32> to vector<1x1x32xf32>
    %cst_11 = arith.constant 1.600000e+01 : f32
    %29 = vector.broadcast %cst_11 : f32 to vector<1x1x32xf32>
    %30 = arith.divf %28, %29 : vector<1x1x32xf32>
    %31 = vector.broadcast %30 : vector<1x1x32xf32> to vector<1x16x32xf32>
    %32 = arith.subf %26, %31 : vector<1x16x32xf32>
    %c0_12 = arith.constant 0 : index
    %c0_13 = arith.constant 0 : index
    %c0_14 = arith.constant 0 : index
    %33 = vector.load %arg4[%c0_12, %c0_13, %c0_14] : memref<1x16x32xf32, #tpu.memory_space<vmem>>, vector<1x16x32xf32>
    tpu.vector_store %arg4[%c0_12, %c0_13, %c0_14], %32 {strides = array<i32>} : memref<1x16x32xf32, #tpu.memory_space<vmem>>, vector<1x16x32xf32>,
    return
  }
  func.func @transform_0(%arg0: i32) -> (i32, i32, i32) {
    %c0_i32 = arith.constant 0 : i32
    %c0_i32_0 = arith.constant 0 : i32
    %c0_i32_1 = arith.constant 0 : i32
    return %arg0, %c0_i32, %c0_i32_0 : i32, i32, i32
  }
  func.func @transform_1(%arg0: i32) -> (i32, i32) {
    %c0_i32 = arith.constant 0 : i32
    %c0_i32_0 = arith.constant 0 : i32
    %c0_i32_1 = arith.constant 0 : i32
    return %c0_i32, %c0_i32_0 : i32, i32
  }
  func.func @transform_2(%arg0: i32) -> (i32, i32) {
    %c0_i32 = arith.constant 0 : i32
    %c0_i32_0 = arith.constant 0 : i32
    %c0_i32_1 = arith.constant 0 : i32
    return %c0_i32, %c0_i32_0 : i32, i32
  }
  func.func @transform_3(%arg0: i32) -> (i32, i32, i32) {
    %c0_i32 = arith.constant 0 : i32
    %c0_i32_0 = arith.constant 0 : i32
    %c0_i32_1 = arith.constant 0 : i32
    return %arg0, %c0_i32, %c0_i32_0 : i32, i32, i32
  }
}

module attributes {stable_mosaic.version = 11 : i64} {
  func.func @_mm_kernel(%arg0: i32, %arg1: i32, %arg2: memref<32x32xf32, #tpu.memory_space<vmem>>, %arg3: memref<32x4xbf16, #tpu.memory_space<vmem>>, %arg4: memref<1x4xf32, #tpu.memory_space<vmem>>, %arg5: memref<32x4xf32, #tpu.memory_space<vmem>>, %arg6: memref<32x4xf32, #tpu.memory_space<vmem>>, %arg7: memref<32x4xf32, #tpu.memory_space<vmem>>) attributes {dimension_semantics = [#tpu.dimension_semantics<parallel>, #tpu.dimension_semantics<arbitrary>], iteration_bounds = array<i64: 1, 1>, scalar_prefetch = 0 : i64, scratch_operands = 1 : i64, tpu.core_type = #tpu.core_type<tc>, window_params = [{transform_indices = @transform_0, window_bounds = array<i64: 32, 32>}, {transform_indices = @transform_1, window_bounds = array<i64: 32, 4>}, {pipeline_mode = #tpu.pipeline_mode<synchronous>, transform_indices = @transform_2, window_bounds = array<i64: 1, 4>}, {transform_indices = @transform_3, window_bounds = array<i64: 32, 4>}, {transform_indices = @transform_4, window_bounds = array<i64: 32, 4>}]} {
    %c0_i32 = arith.constant 0 : i32
    %0 = arith.cmpi eq, %arg1, %c0_i32 : i32
    %1 = arith.extui %0 : i1 to i32
    %c0_i32_0 = arith.constant 0 : i32
    %2 = arith.cmpi ne, %1, %c0_i32_0 : i32
    scf.if %2 {
      %cst_10 = arith.constant 0.000000e+00 : f32
      %13 = vector.broadcast %cst_10 : f32 to vector<32x4xf32>
      %c0_11 = arith.constant 0 : index
      %c0_12 = arith.constant 0 : index
      %14 = vector.load %arg7[%c0_11, %c0_12] : memref<32x4xf32, #tpu.memory_space<vmem>>, vector<32x4xf32>
      tpu.vector_store %arg7[%c0_11, %c0_12], %13 {strides = array<i32>} : memref<32x4xf32, #tpu.memory_space<vmem>>, vector<32x4xf32>,
    } else {
    }
    %c0 = arith.constant 0 : index
    %c0_1 = arith.constant 0 : index
    %3 = vector.load %arg7[%c0, %c0_1] : memref<32x4xf32, #tpu.memory_space<vmem>>, vector<32x4xf32>
    %c0_2 = arith.constant 0 : index
    %c0_3 = arith.constant 0 : index
    %4 = vector.load %arg2[%c0_2, %c0_3] : memref<32x32xf32, #tpu.memory_space<vmem>>, vector<32x32xf32>
    %5 = arith.truncf %4 : vector<32x32xf32> to vector<32x32xbf16>
    %c0_4 = arith.constant 0 : index
    %c0_5 = arith.constant 0 : index
    %6 = vector.load %arg3[%c0_4, %c0_5] : memref<32x4xbf16, #tpu.memory_space<vmem>>, vector<32x4xbf16>
    %cst = arith.constant dense<0.000000e+00> : vector<32x4xf32>
    %7 = tpu.matmul %5, %6, %cst {dimension_numbers = #tpu.dot_dimension_numbers<[1], [0], [0], [1], [0, 0, 1, 1], [], []>} : vector<32x32xbf16>, vector<32x4xbf16>, vector<32x4xf32> -> vector<32x4xf32>
    %8 = arith.addf %3, %7 : vector<32x4xf32>
    %c0_6 = arith.constant 0 : index
    %c0_7 = arith.constant 0 : index
    %9 = vector.load %arg7[%c0_6, %c0_7] : memref<32x4xf32, #tpu.memory_space<vmem>>, vector<32x4xf32>
    tpu.vector_store %arg7[%c0_6, %c0_7], %8 {strides = array<i32>} : memref<32x4xf32, #tpu.memory_space<vmem>>, vector<32x4xf32>,
    %c0_i32_8 = arith.constant 0 : i32
    %10 = arith.cmpi eq, %arg1, %c0_i32_8 : i32
    %11 = arith.extui %10 : i1 to i32
    %c0_i32_9 = arith.constant 0 : i32
    %12 = arith.cmpi ne, %11, %c0_i32_9 : i32
    scf.if %12 {
      %c0_10 = arith.constant 0 : index
      %c0_11 = arith.constant 0 : index
      %13 = vector.load %arg7[%c0_10, %c0_11] : memref<32x4xf32, #tpu.memory_space<vmem>>, vector<32x4xf32>
      %c0_12 = arith.constant 0 : index
      %c0_13 = arith.constant 0 : index
      %14 = vector.load %arg4[%c0_12, %c0_13] : memref<1x4xf32, #tpu.memory_space<vmem>>, vector<1x4xf32>
      %15 = vector.broadcast %14 : vector<1x4xf32> to vector<32x4xf32>
      %16 = arith.addf %13, %15 : vector<32x4xf32>
      %c0_14 = arith.constant 0 : index
      %c0_15 = arith.constant 0 : index
      %17 = vector.load %arg5[%c0_14, %c0_15] : memref<32x4xf32, #tpu.memory_space<vmem>>, vector<32x4xf32>
      %18 = arith.addf %16, %17 : vector<32x4xf32>
      %c0_16 = arith.constant 0 : index
      %c0_17 = arith.constant 0 : index
      %19 = vector.load %arg6[%c0_16, %c0_17] : memref<32x4xf32, #tpu.memory_space<vmem>>, vector<32x4xf32>
      tpu.vector_store %arg6[%c0_16, %c0_17], %18 {strides = array<i32>} : memref<32x4xf32, #tpu.memory_space<vmem>>, vector<32x4xf32>,
    } else {
    }
    return
  }
  func.func @transform_0(%arg0: i32, %arg1: i32) -> (i32, i32) {
    %c0_i32 = arith.constant 0 : i32
    return %arg0, %arg1 : i32, i32
  }
  func.func @transform_1(%arg0: i32, %arg1: i32) -> (i32, i32) {
    %c0_i32 = arith.constant 0 : i32
    %c0_i32_0 = arith.constant 0 : i32
    return %arg1, %c0_i32 : i32, i32
  }
  func.func @transform_2(%arg0: i32, %arg1: i32) -> (i32, i32) {
    %c0_i32 = arith.constant 0 : i32
    %c0_i32_0 = arith.constant 0 : i32
    %c0_i32_1 = arith.constant 0 : i32
    return %c0_i32, %c0_i32_0 : i32, i32
  }
  func.func @transform_3(%arg0: i32, %arg1: i32) -> (i32, i32) {
    %c0_i32 = arith.constant 0 : i32
    %c0_i32_0 = arith.constant 0 : i32
    return %arg0, %c0_i32 : i32, i32
  }
  func.func @transform_4(%arg0: i32, %arg1: i32) -> (i32, i32) {
    %c0_i32 = arith.constant 0 : i32
    %c0_i32_0 = arith.constant 0 : i32
    return %arg0, %c0_i32 : i32, i32
  }
}

module attributes {stable_mosaic.version = 11 : i64} {
  func.func @_trend_kernel(%arg0: i32, %arg1: memref<1x16x32xf32, #tpu.memory_space<vmem>>, %arg2: memref<1x16x32xf32, #tpu.memory_space<vmem>>, %arg3: memref<1x16x32xf32, #tpu.memory_space<vmem>>, %arg4: memref<1x16x4xf32, #tpu.memory_space<vmem>>, %arg5: memref<3x32x4xbf16, #tpu.memory_space<vmem>>, %arg6: memref<1x16x4xf32, #tpu.memory_space<vmem>>) attributes {dimension_semantics = [#tpu.dimension_semantics<parallel>], iteration_bounds = array<i64: 2>, scalar_prefetch = 0 : i64, scratch_operands = 0 : i64, tpu.core_type = #tpu.core_type<tc>, window_params = [{transform_indices = @transform_0, window_bounds = array<i64: 1, 16, 32>}, {transform_indices = @transform_1, window_bounds = array<i64: 1, 16, 32>}, {transform_indices = @transform_2, window_bounds = array<i64: 1, 16, 32>}, {transform_indices = @transform_3, window_bounds = array<i64: 1, 16, 4>}, {pipeline_mode = #tpu.pipeline_mode<synchronous>, transform_indices = @transform_4, window_bounds = array<i64: 3, 32, 4>}, {transform_indices = @transform_5, window_bounds = array<i64: 1, 16, 4>}]} {
    %c0 = arith.constant 0 : index
    %c0_0 = arith.constant 0 : index
    %c0_1 = arith.constant 0 : index
    %0 = vector.load %arg5[%c0, %c0_0, %c0_1] : memref<3x32x4xbf16, #tpu.memory_space<vmem>>, vector<1x32x4xbf16>
    %1 = vector.shape_cast %0 : vector<1x32x4xbf16> to vector<32x4xbf16>
    %c1 = arith.constant 1 : index
    %c0_2 = arith.constant 0 : index
    %c0_3 = arith.constant 0 : index
    %2 = vector.load %arg5[%c1, %c0_2, %c0_3] : memref<3x32x4xbf16, #tpu.memory_space<vmem>>, vector<1x32x4xbf16>
    %3 = vector.shape_cast %2 : vector<1x32x4xbf16> to vector<32x4xbf16>
    %c2 = arith.constant 2 : index
    %c0_4 = arith.constant 0 : index
    %c0_5 = arith.constant 0 : index
    %4 = vector.load %arg5[%c2, %c0_4, %c0_5] : memref<3x32x4xbf16, #tpu.memory_space<vmem>>, vector<1x32x4xbf16>
    %5 = vector.shape_cast %4 : vector<1x32x4xbf16> to vector<32x4xbf16>
    %c0_6 = arith.constant 0 : index
    %c0_7 = arith.constant 0 : index
    %c0_8 = arith.constant 0 : index
    %6 = vector.load %arg1[%c0_6, %c0_7, %c0_8] : memref<1x16x32xf32, #tpu.memory_space<vmem>>, vector<1x16x32xf32>
    %7 = vector.shape_cast %6 : vector<1x16x32xf32> to vector<16x32xf32>
    %c0_9 = arith.constant 0 : index
    %c0_10 = arith.constant 0 : index
    %c0_11 = arith.constant 0 : index
    %8 = vector.load %arg2[%c0_9, %c0_10, %c0_11] : memref<1x16x32xf32, #tpu.memory_space<vmem>>, vector<1x16x32xf32>
    %9 = vector.shape_cast %8 : vector<1x16x32xf32> to vector<16x32xf32>
    %10 = arith.addf %7, %9 : vector<16x32xf32>
    %c0_12 = arith.constant 0 : index
    %c0_13 = arith.constant 0 : index
    %c0_14 = arith.constant 0 : index
    %11 = vector.load %arg3[%c0_12, %c0_13, %c0_14] : memref<1x16x32xf32, #tpu.memory_space<vmem>>, vector<1x16x32xf32>
    %12 = vector.shape_cast %11 : vector<1x16x32xf32> to vector<16x32xf32>
    %13 = arith.addf %10, %12 : vector<16x32xf32>
    %14 = arith.truncf %13 : vector<16x32xf32> to vector<16x32xbf16>
    %c0_15 = arith.constant 0 : index
    %c0_16 = arith.constant 0 : index
    %c0_17 = arith.constant 0 : index
    %15 = vector.load %arg4[%c0_15, %c0_16, %c0_17] : memref<1x16x4xf32, #tpu.memory_space<vmem>>, vector<1x16x4xf32>
    %16 = vector.shape_cast %15 : vector<1x16x4xf32> to vector<16x4xf32>
    %cst = arith.constant dense<0.000000e+00> : vector<16x4xf32>
    %17 = tpu.matmul %14, %1, %cst {dimension_numbers = #tpu.dot_dimension_numbers<[1], [0], [0], [1], [0, 0, 1, 1], [], []>} : vector<16x32xbf16>, vector<32x4xbf16>, vector<16x4xf32> -> vector<16x4xf32>
    %c1_i32 = arith.constant 1 : i32
    %18 = tpu.dynamic_rotate %17 by %c1_i32 dim 0 : vector<16x4xf32>, i32 -> vector<16x4xf32>
    %19 = arith.addf %16, %18 : vector<16x4xf32>
    %cst_18 = arith.constant dense<0.000000e+00> : vector<16x4xf32>
    %20 = tpu.matmul %14, %3, %cst_18 {dimension_numbers = #tpu.dot_dimension_numbers<[1], [0], [0], [1], [0, 0, 1, 1], [], []>} : vector<16x32xbf16>, vector<32x4xbf16>, vector<16x4xf32> -> vector<16x4xf32>
    %21 = arith.addf %19, %20 : vector<16x4xf32>
    %cst_19 = arith.constant dense<0.000000e+00> : vector<16x4xf32>
    %22 = tpu.matmul %14, %5, %cst_19 {dimension_numbers = #tpu.dot_dimension_numbers<[1], [0], [0], [1], [0, 0, 1, 1], [], []>} : vector<16x32xbf16>, vector<32x4xbf16>, vector<16x4xf32> -> vector<16x4xf32>
    %c15_i32 = arith.constant 15 : i32
    %23 = tpu.dynamic_rotate %22 by %c15_i32 dim 0 : vector<16x4xf32>, i32 -> vector<16x4xf32>
    %24 = arith.addf %21, %23 : vector<16x4xf32>
    %c0_20 = arith.constant 0 : index
    %c0_21 = arith.constant 0 : index
    %c0_22 = arith.constant 0 : index
    %25 = vector.load %arg6[%c0_20, %c0_21, %c0_22] : memref<1x16x4xf32, #tpu.memory_space<vmem>>, vector<1x16x4xf32>
    %26 = vector.shape_cast %25 : vector<1x16x4xf32> to vector<16x4xf32>
    %27 = vector.shape_cast %24 : vector<16x4xf32> to vector<1x16x4xf32>
    tpu.vector_store %arg6[%c0_20, %c0_21, %c0_22], %27 {strides = array<i32>} : memref<1x16x4xf32, #tpu.memory_space<vmem>>, vector<1x16x4xf32>,
    return
  }
  func.func @transform_0(%arg0: i32) -> (i32, i32, i32) {
    %c0_i32 = arith.constant 0 : i32
    %c0_i32_0 = arith.constant 0 : i32
    %c0_i32_1 = arith.constant 0 : i32
    return %arg0, %c0_i32, %c0_i32_0 : i32, i32, i32
  }
  func.func @transform_1(%arg0: i32) -> (i32, i32, i32) {
    %c0_i32 = arith.constant 0 : i32
    %c0_i32_0 = arith.constant 0 : i32
    %c0_i32_1 = arith.constant 0 : i32
    return %arg0, %c0_i32, %c0_i32_0 : i32, i32, i32
  }
  func.func @transform_2(%arg0: i32) -> (i32, i32, i32) {
    %c0_i32 = arith.constant 0 : i32
    %c0_i32_0 = arith.constant 0 : i32
    %c0_i32_1 = arith.constant 0 : i32
    return %arg0, %c0_i32, %c0_i32_0 : i32, i32, i32
  }
  func.func @transform_3(%arg0: i32) -> (i32, i32, i32) {
    %c0_i32 = arith.constant 0 : i32
    %c0_i32_0 = arith.constant 0 : i32
    %c0_i32_1 = arith.constant 0 : i32
    return %arg0, %c0_i32, %c0_i32_0 : i32, i32, i32
  }
  func.func @transform_4(%arg0: i32) -> (i32, i32, i32) {
    %c0_i32 = arith.constant 0 : i32
    %c0_i32_0 = arith.constant 0 : i32
    %c0_i32_1 = arith.constant 0 : i32
    %c0_i32_2 = arith.constant 0 : i32
    return %c0_i32, %c0_i32_0, %c0_i32_1 : i32, i32, i32
  }
  func.func @transform_5(%arg0: i32) -> (i32, i32, i32) {
    %c0_i32 = arith.constant 0 : i32
    %c0_i32_0 = arith.constant 0 : i32
    %c0_i32_1 = arith.constant 0 : i32
    return %arg0, %c0_i32, %c0_i32_0 : i32, i32, i32
  }
}

</mosaic_0001>

<bundles_post_ra>
// kernel: reverse.7
= control target key start
LH: loop header
LB: loop body
LE: loop exit
PB: predicated region body
PF: predicated region fallthrough
CT: control target
= control target key end

     0   :  { %v2_v0 = vlaneseq  ;;  %s238_s0 = inlined_call_operand.vmem [shape: f32[2,4,8,7], index: 0, kind: input, shape index: {}]   ;;  %s239_s1 = inlined_call_operand.vmem [shape: f32[2,4,8,7], index: 1, kind: output, shape index: {}]  }
   0x1   :  { %v50_v2 = vld [vmem:[%s238_s0 + $0x10] sm:$0xff]  ;;  %v46_v3 = vld [vmem:[%s238_s0] sm:$0xff]  ;;  %v52_v4 = vld [vmem:[%s238_s0 + $0x18] sm:$0xff] }
   0x2   :  { %v3_v1 = vsub.s32 6, %v2_v0  ;;  %v48_v5 = vld [vmem:[%s238_s0 + $0x8] sm:$0xff]  ;;  %v54_v7 = vld [vmem:[%s238_s0 + $0x20] sm:$0xff]  ;;  %v60_v8 = vld [vmem:[%s238_s0 + $0x38] sm:$0xff] }
   0x3   :  { %v56_v6 = vld [vmem:[%s238_s0 + $0x28] sm:$0xff]  ;;  %v58_v9 = vld [vmem:[%s238_s0 + $0x30] sm:$0xff] }
   0x4   :  { %4 = vset.pattern.permute.xlu0 %v3_v1  ;;  %179 = vset.pattern.permute.xlu1 %v3_v1 }
   0x5   :  { %78 = vperm.xlu1 %179, %v50_v2   ;;  %66 = vperm.xlu0 %4, %v46_v3  }
   0x9   :  { %84 = vperm.xlu1 %179, %v52_v4   ;;  %72 = vperm.xlu0 %4, %v48_v5  }
   0xd   :  { %96 = vperm.xlu1 %179, %v56_v6   ;;  %90 = vperm.xlu0 %4, %v54_v7  }
  0x11   :  { %108 = vperm.xlu1 %179, %v60_v8   ;;  %102 = vperm.xlu0 %4, %v58_v9  }
  0x84   :  { %v79_v10 = vpop.permute.xlu1 %78  ;;  %v67_v11 = vpop.permute.xlu0 %66 }
  0x85   :  { %157 = vst [vmem:[%s239_s1 + $0x10] sm:$0xff] %v79_v10  ;;  %153 = vst [vmem:[%s239_s1] sm:$0xff] %v67_v11 }
  0x88   :  { %v85_v12 = vpop.permute.xlu1 %84  ;;  %v73_v13 = vpop.permute.xlu0 %72 }
  0x89   :  { %159 = vst [vmem:[%s239_s1 + $0x18] sm:$0xff] %v85_v12  ;;  %155 = vst [vmem:[%s239_s1 + $0x8] sm:$0xff] %v73_v13 }
  0x8c   :  { %v97_v14 = vpop.permute.xlu1 %96  ;;  %v91_v15 = vpop.permute.xlu0 %90 }
  0x8d   :  { %163 = vst [vmem:[%s239_s1 + $0x28] sm:$0xff] %v97_v14  ;;  %161 = vst [vmem:[%s239_s1 + $0x20] sm:$0xff] %v91_v15 }
  0x90   :  { %v109_v16 = vpop.permute.xlu1 %108  ;;  %v103_v17 = vpop.permute.xlu0 %102 }
  0x91   :  { %167 = vst [vmem:[%s239_s1 + $0x38] sm:$0xff] %v109_v16  ;;  %165 = vst [vmem:[%s239_s1 + $0x30] sm:$0xff] %v103_v17 }

// kernel: _lambda_.24
= control target key start
LH: loop header
LB: loop body
LE: loop exit
PB: predicated region body
PF: predicated region fallthrough
CT: control target
= control target key end

     0   :  { %vm16_vm0 = vcmask 261120   ;;  %v133_v1 = vmov 0.0   ;;  %vm39_vm1 = vcmask 130048   ;;  %s188_s1 = inlined_call_operand.vmem [shape: bf16[16,32], index: 1, kind: input, shape index: {}]   ;;  %s189_s0 = inlined_call_operand.vmem [shape: f32[32,16], index: 0, kind: input, shape index: {}]   ;;  %s190_s2 = inlined_call_operand.vmem [shape: f32[32,32], index: 2, kind: output, shape index: {}]  }
   0x1   :  { %v132_v0 = vld [vmem:[%s188_s1] sm:$0xff]   ;;  %19 = vst.msk [vmem:[#allocation2 + $0x10] sm:$0xff] %vm16_vm0, %v133_v1  ;;  %17 = vst.msk [vmem:[#allocation2] sm:$0xff] %vm16_vm0, %v133_v1  ;;  %v26_v3 = vld [vmem:[%s189_s0 + $0x8] sm:$0xff] }
   0x2   :  { %18 = vst.msk [vmem:[#allocation2 + $0x8] sm:$0xff] %vm16_vm0, %v133_v1  ;;  %20 = vst.msk [vmem:[#allocation2 + $0x18] sm:$0xff] %vm16_vm0, %v133_v1  ;;  %v25_v2 = vld [vmem:[%s189_s0] sm:$0xff]  ;;  %v27_v4 = vld [vmem:[%s189_s0 + $0x10] sm:$0xff]  ;;  %125 = vmatprep.subr.bf16.mxu0 %v132_v0 }
   0x3   :  { %v29_v5 = vpack.c.bf16 %v26_v3, %v25_v2  ;;  %v28_v6 = vld [vmem:[%s189_s0 + $0x18] sm:$0xff]  ;;  %126 = vmatpush3.bf16.msra.mxu0 %v132_v0 }
   0x4   :  { %v30_v7 = vpack.c.bf16 %v28_v6, %v27_v4 }
   0x5   :  { %127 = vmatprep.mubr.msk.bf16.mxu0 %vm39_vm1, %v29_v5 }
   0x6   :  { %128 = vmatmul.mubr.msk.bf16.vlgmr.msra.gmra.mrb[0].mxu0 %vm39_vm1, %v30_v7 }
   0x8   :  { %v23_v8 = vld [vmem:[#allocation2 + $0x10] sm:$0xff]  ;;  %v21_v9 = vld [vmem:[#allocation2] sm:$0xff] }
   0x9   :  { %v24_v11 = vld [vmem:[#allocation2 + $0x18] sm:$0xff]  ;;  %v22_v14 = vld [vmem:[#allocation2 + $0x8] sm:$0xff] }
  0xd9   :  { %v129_v10 = vpop.f32.mrb[0].mxu0 }
  0xda   :  { %v97_v12 = vadd.f32 %v129_v10, %v23_v8  ;;  %v80_v13 = vpop.f32.mrb[1].mxu0 }
  0xdb   :  { %v95_v15 = vadd.f32 %v80_v13, %v21_v9  ;;  %v130_v16 = vpop.f32.mrb[2].mxu0 }
  0xdc   :  { %102 = vst.msk [vmem:[#allocation2 + $0x10] sm:$0xff] %vm16_vm0, %v97_v12  ;;  %v98_v17 = vadd.f32 %v130_v16, %v24_v11  ;;  %v83_v18 = vpop.f32.mrb[3].mxu0 }
  0xdd   :  { %100 = vst.msk [vmem:[#allocation2] sm:$0xff] %vm16_vm0, %v95_v15  ;;  %v96_v19 = vadd.f32 %v83_v18, %v22_v14 }
  0xde   :  { %103 = vst.msk [vmem:[#allocation2 + $0x18] sm:$0xff] %vm16_vm0, %v98_v17 }
  0xdf   :  { %101 = vst.msk [vmem:[#allocation2 + $0x8] sm:$0xff] %vm16_vm0, %v96_v19 }
  0xe3   :  { %v109_v20 = vld [vmem:[#allocation2 + $0x10] sm:$0xff] }
  0xe4   :  { %113 = vst.msk [vmem:[%s190_s2 + $0x10] sm:$0xff] %vm16_vm0, %v109_v20  ;;  %v107_v21 = vld [vmem:[#allocation2] sm:$0xff] }
  0xe5   :  { %111 = vst.msk [vmem:[%s190_s2] sm:$0xff] %vm16_vm0, %v107_v21  ;;  %v110_v22 = vld [vmem:[#allocation2 + $0x18] sm:$0xff] }
  0xe6   :  { %114 = vst.msk [vmem:[%s190_s2 + $0x18] sm:$0xff] %vm16_vm0, %v110_v22  ;;  %v108_v23 = vld [vmem:[#allocation2 + $0x8] sm:$0xff] }
  0xe7   :  { %112 = vst.msk [vmem:[%s190_s2 + $0x8] sm:$0xff] %vm16_vm0, %v108_v23 }

// kernel: _lambda_.25
= control target key start
LH: loop header
LB: loop body
LE: loop exit
PB: predicated region body
PF: predicated region fallthrough
CT: control target
= control target key end

     0   :  { %vm19_vm0 = vcmask 785408   ;;  %v161_v1 = vmov 0.0   ;;  %vm50_vm1 = vcmask 261120   ;;  %s227_s1 = inlined_call_operand.vmem [shape: bf16[32,96], index: 1, kind: input, shape index: {}]   ;;  %s228_s0 = inlined_call_operand.vmem [shape: f32[32,32], index: 0, kind: input, shape index: {}]   ;;  %s229_s2 = inlined_call_operand.vmem [shape: f32[1,96], index: 2, kind: input, shape index: {}]   ;;  %s230_s3 = inlined_call_operand.vmem [shape: f32[32,96], index: 3, kind: output, shape index: {}]  }
   0x1   :  { %v159_v0 = vld [vmem:[%s227_s1] sm:$0xff]   ;;  %22 = vst.msk [vmem:[#allocation2 + $0x10] sm:$0xff] %vm19_vm0, %v161_v1  ;;  %20 = vst.msk [vmem:[#allocation2] sm:$0xff] %vm19_vm0, %v161_v1  ;;  %v160_v2 = vld [vmem:[%s227_s1 + $0x8] sm:$0xff]  }
   0x2   :  { %21 = vst.msk [vmem:[#allocation2 + $0x8] sm:$0xff] %vm19_vm0, %v161_v1  ;;  %23 = vst.msk [vmem:[#allocation2 + $0x18] sm:$0xff] %vm19_vm0, %v161_v1  ;;  %150 = vmatprep.subr.bf16.mxu0 %v159_v0  ;;  %v28_v3 = vld [vmem:[%s228_s0] sm:$0xff]  ;;  %v29_v4 = vld [vmem:[%s228_s0 + $0x8] sm:$0xff] }
   0x3   :  { %151 = vmatpush3.bf16.msra.mxu0 %v159_v0  ;;  %v32_v5 = vpack.c.bf16 %v29_v4, %v28_v3  ;;  %v30_v6 = vld [vmem:[%s228_s0 + $0x10] sm:$0xff]  ;;  %v31_v7 = vld [vmem:[%s228_s0 + $0x18] sm:$0xff]  ;;  %v145_v21 = vld [vmem:[%s229_s2] ss:$0 sm:$0xff] }
   0x4   :  { %152 = vmatprep.subr.bf16.mxu0 %v160_v2  ;;  %v33_v8 = vpack.c.bf16 %v31_v7, %v30_v6 }
   0x5   :  { %154 = vmatprep.mubr.msk.bf16.mxu0 %vm50_vm1, %v32_v5 }
   0x7   :  { %153 = vmatpush3.bf16.msra.mxu0 %v160_v2 }
   0x8   :  { %v26_v9 = vld [vmem:[#allocation2 + $0x10] sm:$0xff]  ;;  %v24_v10 = vld [vmem:[#allocation2] sm:$0xff] }
   0x9   :  { %v27_v12 = vld [vmem:[#allocation2 + $0x18] sm:$0xff]  ;;  %v25_v15 = vld [vmem:[#allocation2 + $0x8] sm:$0xff] }
   0xa   :  { %155 = vmatmul.mubr.msk.bf16.vlgmr.msra.gmra.mrb[0].mxu0 %vm50_vm1, %v33_v8 }
  0xdd   :  { %v156_v11 = vpop.f32.mrb[0].mxu0 }
  0xde   :  { %v108_v13 = vadd.f32 %v156_v11, %v26_v9  ;;  %v91_v14 = vpop.f32.mrb[1].mxu0 }
  0xdf   :  { %v106_v16 = vadd.f32 %v91_v14, %v24_v10  ;;  %v157_v17 = vpop.f32.mrb[2].mxu0 }
  0xe0   :  { %113 = vst.msk [vmem:[#allocation2 + $0x10] sm:$0xff] %vm19_vm0, %v108_v13  ;;  %v109_v18 = vadd.f32 %v157_v17, %v27_v12  ;;  %v94_v19 = vpop.f32.mrb[3].mxu0 }
  0xe1   :  { %111 = vst.msk [vmem:[#allocation2] sm:$0xff] %vm19_vm0, %v106_v16  ;;  %v107_v20 = vadd.f32 %v94_v19, %v25_v15 }
  0xe2   :  { %114 = vst.msk [vmem:[#allocation2 + $0x18] sm:$0xff] %vm19_vm0, %v109_v18 }
  0xe3   :  { %112 = vst.msk [vmem:[#allocation2 + $0x8] sm:$0xff] %vm19_vm0, %v107_v20 }
  0xe7   :  { %v120_v22 = vld [vmem:[#allocation2 + $0x10] sm:$0xff] }
  0xe8   :  { %v131_v23 = vadd.f32 %v145_v21, %v120_v22  ;;  %v118_v24 = vld [vmem:[#allocation2] sm:$0xff] }
  0xe9   :  { %v129_v25 = vadd.f32 %v145_v21, %v118_v24  ;;  %v121_v26 = vld [vmem:[#allocation2 + $0x18] sm:$0xff] }
  0xea   :  { %135 = vst.msk [vmem:[%s230_s3 + $0x10] sm:$0xff] %vm19_vm0, %v131_v23  ;;  %v132_v27 = vadd.f32 %v145_v21, %v121_v26  ;;  %v119_v28 = vld [vmem:[#allocation2 + $0x8] sm:$0xff] }
  0xeb   :  { %133 = vst.msk [vmem:[%s230_s3] sm:$0xff] %vm19_vm0, %v129_v25  ;;  %v130_v29 = vadd.f32 %v145_v21, %v119_v28 }
  0xec   :  { %136 = vst.msk [vmem:[%s230_s3 + $0x18] sm:$0xff] %vm19_vm0, %v132_v27 }
  0xed   :  { %134 = vst.msk [vmem:[%s230_s3 + $0x8] sm:$0xff] %vm19_vm0, %v130_v29 }

// kernel: _lambda_.33
= control target key start
LH: loop header
LB: loop body
LE: loop exit
PB: predicated region body
PF: predicated region fallthrough
CT: control target
= control target key end

     0   :  { %s396_s12 = smov 0   ;;  %s422_s0 = inlined_call_operand.vmem [shape: f32[16,16], index: 0, kind: input, shape index: {}]   ;;  %s423_s1 = inlined_call_operand.vmem [shape: f32[2,16,4], index: 1, kind: input, shape index: {}]   ;;  %s424_s2 = inlined_call_operand.vmem [shape: f32[2,16,4], index: 2, kind: output, shape index: {0}]   ;;  %s425_s3 = inlined_call_operand.vmem [shape: f32[2,16,4], index: 3, kind: output, shape index: {1}]  }
   0x1 LB: > { %s331_s13 = sadd.s32 4294967295, %s372_s12   ;;  %p335_p0 = scmp.ge.s32.totalorder %s372_s12, 1  ;;  %s372_s12 = sphi %s396_s12, %s14_s12  }
   0x2   : > { %p140_p1 = scmp.lt.s32.totalorder %s372_s12, 3 }
   0x4   : > { %p141_p2 = pnand %p335_p0, %p140_p1 }
   0x5   : > { %p169_p3 = scmp.lt.s32.totalorder (!%p141_p2), %s331_s13, 1  ;;  %v374_v0 = vmov (!%p141_p2), 0.0   ;;  %vm375_vm0 = vmmov (!%p141_p2), 0   ;;  %v185_v1 = vld [vmem:[%s422_s0] sm:$0xff] (!%p141_p2)  ;;  %v186_v2 = vld [vmem:[%s422_s0 + $0x8] sm:$0xff] (!%p141_p2)  ;;  %vm191_vm1 = vcmask (!%p141_p2), 130048  }
   0x6   : > { %144 = sbr.rel (%p141_p2) target bundleno = 239 (0xef), region = 28  ;;  %350 = vmatprep.subr.bf16.mxu0 (!%p141_p2), %v374_v0  ;;  %352 = vmatprep.mubr.msk.bf16.mxu0 (!%p141_p2), %vm375_vm0, %v374_v0  ;;  %v187_v6 = vpack.c.bf16 (!%p141_p2), %v186_v2, %v185_v1  ;;  %vm236_vm2 = vcmask (!%p141_p2), 31744  }
   0xd   : > { %s427_s13 = smov (!%p169_p3, %s331_s13), 1 }
   0xe   : > { %s345_s14 = sshll.u32 %s427_s13, 4 }
   0xf   : > { %s173_s17 = scalar_lea.vmem %s423_s1, %s345_s14  ;;  %s183_s24 = scalar_lea.vmem %s425_s3, %s345_s14 }
  0x10   : > { %v188_v3 = vld [vmem:[%s173_s17] sm:$0xff]  ;;  %v189_v4 = vld [vmem:[%s173_s17 + $0x8] sm:$0xff]  ;;  %s178_s27 = scalar_lea.vmem %s424_s2, %s345_s14 }
  0x11   : > { %v190_v5 = vpack.c.bf16 %v189_v4, %v188_v3 }
  0x13   : > { %351 = vmatpush3.bf16.msra.mxu0 %v190_v5 }
  0x16   : > { %353 = vmatmul.mubr.msk.bf16.vlgmr.msra.gmra.mrb[0].mxu0 %vm191_vm1, %v187_v6 }
  0xe9   : > { %v229_v7 = vpop.f32.mrb[0].mxu0 }
  0xea   : > { %237 = vst.msk [vmem:[%s183_s24] sm:$0xff] %vm236_vm2, %v229_v7  ;;  %v239_v8 = vsub.f32 %v188_v3, %v229_v7  ;;  %v354_v9 = vpop.f32.mrb[1].mxu0 }
  0xeb   : > { %v232_v10 = vpop.f32.mrb[2].mxu0 }
  0xec   : > { %241 = vst.msk [vmem:[%s178_s27] sm:$0xff] %vm236_vm2, %v239_v8  ;;  %238 = vst.msk [vmem:[%s183_s24 + $0x8] sm:$0xff] %vm236_vm2, %v232_v10  ;;  %v240_v11 = vsub.f32 %v189_v4, %v232_v10  ;;  %v355_v12 = vpop.f32.mrb[3].mxu0 }
  0xee   : > { %242 = vst.msk [vmem:[%s178_s27 + $0x8] sm:$0xff] %vm236_vm2, %v240_v11 }
  0xef PF: > { %s14_s12 = sadd.s32 1, %s372_s12  }
  0xf0   : > { %p11_p4 = scmp.ge.s32.totalorder %s14_s12, 4  }
  0xf2   :  { %13 = sbr.rel (!%p11_p4) target bundleno = 1 (0x1), region = 70 }

// kernel: _lambda_.38
= control target key start
LH: loop header
LB: loop body
LE: loop exit
PB: predicated region body
PF: predicated region fallthrough
CT: control target
= control target key end

     0   :  { %s396_s12 = smov 0   ;;  %s422_s0 = inlined_call_operand.vmem [shape: f32[16,16], index: 0, kind: input, shape index: {}]   ;;  %s423_s1 = inlined_call_operand.vmem [shape: f32[2,16,32], index: 1, kind: input, shape index: {}]   ;;  %s424_s2 = inlined_call_operand.vmem [shape: f32[2,16,32], index: 2, kind: output, shape index: {0}]   ;;  %s425_s3 = inlined_call_operand.vmem [shape: f32[2,16,32], index: 3, kind: output, shape index: {1}]  }
   0x1 LB: > { %s331_s13 = sadd.s32 4294967295, %s372_s12   ;;  %p335_p0 = scmp.ge.s32.totalorder %s372_s12, 1  ;;  %s372_s12 = sphi %s396_s12, %s14_s12  }
   0x2   : > { %p140_p1 = scmp.lt.s32.totalorder %s372_s12, 3 }
   0x4   : > { %p141_p2 = pnand %p335_p0, %p140_p1 }
   0x5   : > { %p169_p3 = scmp.lt.s32.totalorder (!%p141_p2), %s331_s13, 1  ;;  %v374_v0 = vmov (!%p141_p2), 0.0   ;;  %vm375_vm0 = vmmov (!%p141_p2), 0   ;;  %v185_v1 = vld [vmem:[%s422_s0] sm:$0xff] (!%p141_p2)  ;;  %v186_v2 = vld [vmem:[%s422_s0 + $0x8] sm:$0xff] (!%p141_p2)  ;;  %vm191_vm1 = vcmask (!%p141_p2), 130048  }
   0x6   : > { %144 = sbr.rel (%p141_p2) target bundleno = 239 (0xef), region = 28  ;;  %350 = vmatprep.subr.bf16.mxu0 (!%p141_p2), %v374_v0  ;;  %352 = vmatprep.mubr.msk.bf16.mxu0 (!%p141_p2), %vm375_vm0, %v374_v0  ;;  %v187_v6 = vpack.c.bf16 (!%p141_p2), %v186_v2, %v185_v1  ;;  %vm236_vm2 = vcmask (!%p141_p2), 261120  }
   0xd   : > { %s427_s13 = smov (!%p169_p3, %s331_s13), 1 }
   0xe   : > { %s345_s14 = sshll.u32 %s427_s13, 4 }
   0xf   : > { %s173_s17 = scalar_lea.vmem %s423_s1, %s345_s14  ;;  %s183_s24 = scalar_lea.vmem %s425_s3, %s345_s14 }
  0x10   : > { %v188_v3 = vld [vmem:[%s173_s17] sm:$0xff]  ;;  %v189_v4 = vld [vmem:[%s173_s17 + $0x8] sm:$0xff]  ;;  %s178_s27 = scalar_lea.vmem %s424_s2, %s345_s14 }
  0x11   : > { %v190_v5 = vpack.c.bf16 %v189_v4, %v188_v3 }
  0x13   : > { %351 = vmatpush3.bf16.msra.mxu0 %v190_v5 }
  0x16   : > { %353 = vmatmul.mubr.msk.bf16.vlgmr.msra.gmra.mrb[0].mxu0 %vm191_vm1, %v187_v6 }
  0xe9   : > { %v229_v7 = vpop.f32.mrb[0].mxu0 }
  0xea   : > { %237 = vst.msk [vmem:[%s183_s24] sm:$0xff] %vm236_vm2, %v229_v7  ;;  %v239_v8 = vsub.f32 %v188_v3, %v229_v7  ;;  %v354_v9 = vpop.f32.mrb[1].mxu0 }
  0xeb   : > { %v232_v10 = vpop.f32.mrb[2].mxu0 }
  0xec   : > { %241 = vst.msk [vmem:[%s178_s27] sm:$0xff] %vm236_vm2, %v239_v8  ;;  %238 = vst.msk [vmem:[%s183_s24 + $0x8] sm:$0xff] %vm236_vm2, %v232_v10  ;;  %v240_v11 = vsub.f32 %v189_v4, %v232_v10  ;;  %v355_v12 = vpop.f32.mrb[3].mxu0 }
  0xee   : > { %242 = vst.msk [vmem:[%s178_s27 + $0x8] sm:$0xff] %vm236_vm2, %v240_v11 }
  0xef PF: > { %s14_s12 = sadd.s32 1, %s372_s12  }
  0xf0   : > { %p11_p4 = scmp.ge.s32.totalorder %s14_s12, 4  }
  0xf2   :  { %13 = sbr.rel (!%p11_p4) target bundleno = 1 (0x1), region = 70 }

// kernel: _lambda_.36
= control target key start
LH: loop header
LB: loop body
LE: loop exit
PB: predicated region body
PF: predicated region fallthrough
CT: control target
= control target key end

     0   :  { %s359_s9 = smov 0   ;;  %s385_s0 = inlined_call_operand.vmem [shape: f32[2,32,16], index: 0, kind: input, shape index: {}]   ;;  %s386_s1 = inlined_call_operand.vmem [shape: f32[2,16,16], index: 1, kind: input, shape index: {}]   ;;  %s387_s2 = inlined_call_operand.vmem [shape: f32[2,32,16], index: 2, kind: output, shape index: {}]  }
   0x1 LB: > { %s301_s10 = sadd.s32 4294967295, %s342_s9   ;;  %p305_p0 = scmp.ge.s32.totalorder %s342_s9, 1  ;;  %s342_s9 = sphi %s359_s9, %s12_s9  }
   0x2   : > { %p122_p1 = scmp.lt.s32.totalorder %s342_s9, 3 }
   0x4   : > { %p123_p2 = pnand %p305_p0, %p122_p1 }
   0x5   : > { %p149_p3 = scmp.lt.s32.totalorder (!%p123_p2), %s301_s10, 1  ;;  %vm174_vm0 = vcmask (!%p123_p2), 130048  }
   0x6   : > { %126 = sbr.rel (%p123_p2) target bundleno = 239 (0xef), region = 28 }
   0xd   : > { %s389_s10 = smov (!%p149_p3, %s301_s10), 1 }
   0xe   : > { %s317_s11 = sshll.u32 %s389_s10, 4  ;;  %s316_s12 = sshll.u32 %s389_s10, 5 }
   0xf   : > { %s158_s15 = scalar_lea.vmem %s386_s1, %s317_s11  ;;  %s153_s18 = scalar_lea.vmem %s385_s0, %s316_s12 }
  0x10   : > { %v171_v0 = vld [vmem:[%s158_s15] sm:$0xff]  ;;  %v172_v1 = vld [vmem:[%s158_s15 + $0x8] sm:$0xff]  ;;  %v167_v5 = vld [vmem:[%s153_s18 + $0x10] sm:$0xff]  ;;  %s163_s21 = scalar_lea.vmem %s387_s2, %s316_s12 }
  0x11   : > { %v165_v2 = vld [vmem:[%s153_s18] sm:$0xff]  ;;  %v173_v3 = vpack.c.bf16 %v172_v1, %v171_v0  ;;  %v166_v4 = vld [vmem:[%s153_s18 + $0x8] sm:$0xff]  ;;  %v168_v6 = vld [vmem:[%s153_s18 + $0x18] sm:$0xff] }
  0x12   : > { %v169_v7 = vpack.c.bf16 %v166_v4, %v165_v2  ;;  %v170_v8 = vpack.c.bf16 %v168_v6, %v167_v5 }
  0x13   : > { %322 = vmatprep.subr.bf16.mxu0 %v173_v3 }
  0x14   : > { %323 = vmatpush3.bf16.msra.mxu0 %v173_v3  ;;  %324 = vmatprep.mubr.msk.bf16.mxu0 %vm174_vm0, %v169_v7 }
  0x17   : > { %325 = vmatmul.mubr.msk.bf16.vlgmr.msra.gmra.mrb[0].mxu0 %vm174_vm0, %v170_v8 }
  0xea   : > { %v326_v9 = vpop.f32.mrb[0].mxu0 }
  0xeb   : > { %232 = vst.msk [vmem:[%s163_s21 + $0x10] sm:$0xff] %vm174_vm0, %v326_v9  ;;  %v215_v10 = vpop.f32.mrb[1].mxu0 }
  0xec   : > { %230 = vst.msk [vmem:[%s163_s21] sm:$0xff] %vm174_vm0, %v215_v10  ;;  %v327_v11 = vpop.f32.mrb[2].mxu0 }
  0xed   : > { %233 = vst.msk [vmem:[%s163_s21 + $0x18] sm:$0xff] %vm174_vm0, %v327_v11  ;;  %v218_v12 = vpop.f32.mrb[3].mxu0 }
  0xee   : > { %231 = vst.msk [vmem:[%s163_s21 + $0x8] sm:$0xff] %vm174_vm0, %v218_v12 }
  0xef PF: > { %s12_s9 = sadd.s32 1, %s342_s9  }
  0xf0   : > { %p9_p4 = scmp.ge.s32.totalorder %s12_s9, 4  }
  0xf2   :  { %11 = sbr.rel (!%p9_p4) target bundleno = 1 (0x1), region = 61 }

// kernel: _lambda_.37
= control target key start
LH: loop header
LB: loop body
LE: loop exit
PB: predicated region body
PF: predicated region fallthrough
CT: control target
= control target key end

     0   :  { %vm22_vm0 = vcmask 261120   ;;  %v171_v1 = vmov 0.0   ;;  %s256_s1 = inlined_call_operand.vmem [shape: bf16[32,32], index: 1, kind: input, shape index: {}]   ;;  %s257_s0 = inlined_call_operand.vmem [shape: f32[32,32], index: 0, kind: input, shape index: {}]   ;;  %s258_s2 = inlined_call_operand.vmem [shape: f32[1,32], index: 2, kind: input, shape index: {}]   ;;  %s259_s3 = inlined_call_operand.vmem [shape: f32[32,32], index: 3, kind: input, shape index: {}]   ;;  %s260_s4 = inlined_call_operand.vmem [shape: f32[32,32], index: 4, kind: output, shape index: {}]  }
   0x1   :  { %v169_v0 = vld [vmem:[%s256_s1] sm:$0xff]   ;;  %25 = vst.msk [vmem:[#allocation2 + $0x10] sm:$0xff] %vm22_vm0, %v171_v1  ;;  %23 = vst.msk [vmem:[#allocation2] sm:$0xff] %vm22_vm0, %v171_v1  ;;  %v170_v2 = vld [vmem:[%s256_s1 + $0x8] sm:$0xff]  }
   0x2   :  { %24 = vst.msk [vmem:[#allocation2 + $0x8] sm:$0xff] %vm22_vm0, %v171_v1  ;;  %26 = vst.msk [vmem:[#allocation2 + $0x18] sm:$0xff] %vm22_vm0, %v171_v1  ;;  %160 = vmatprep.subr.bf16.mxu0 %v169_v0  ;;  %v31_v3 = vld [vmem:[%s257_s0] sm:$0xff]  ;;  %v32_v4 = vld [vmem:[%s257_s0 + $0x8] sm:$0xff] }
   0x3   :  { %161 = vmatpush3.bf16.msra.mxu0 %v169_v0  ;;  %v35_v5 = vpack.c.bf16 %v32_v4, %v31_v3  ;;  %v33_v6 = vld [vmem:[%s257_s0 + $0x10] sm:$0xff]  ;;  %v34_v7 = vld [vmem:[%s257_s0 + $0x18] sm:$0xff]  ;;  %v155_v21 = vld [vmem:[%s258_s2] ss:$0 sm:$0xff] }
   0x4   :  { %162 = vmatprep.subr.bf16.mxu0 %v170_v2  ;;  %v36_v8 = vpack.c.bf16 %v34_v7, %v33_v6  ;;  %v137_v23 = vld [vmem:[%s259_s3 + $0x10] sm:$0xff]  ;;  %v135_v26 = vld [vmem:[%s259_s3] sm:$0xff]  ;;  %v138_v29 = vld [vmem:[%s259_s3 + $0x18] sm:$0xff] }
   0x5   :  { %164 = vmatprep.mubr.msk.bf16.mxu0 %vm22_vm0, %v35_v5  ;;  %v136_v33 = vld [vmem:[%s259_s3 + $0x8] sm:$0xff] }
   0x7   :  { %163 = vmatpush3.bf16.msra.mxu0 %v170_v2 }
   0x8   :  { %v29_v9 = vld [vmem:[#allocation2 + $0x10] sm:$0xff]  ;;  %v27_v10 = vld [vmem:[#allocation2] sm:$0xff] }
   0x9   :  { %v30_v12 = vld [vmem:[#allocation2 + $0x18] sm:$0xff]  ;;  %v28_v15 = vld [vmem:[#allocation2 + $0x8] sm:$0xff] }
   0xa   :  { %165 = vmatmul.mubr.msk.bf16.vlgmr.msra.gmra.mrb[0].mxu0 %vm22_vm0, %v36_v8 }
  0xdd   :  { %v166_v11 = vpop.f32.mrb[0].mxu0 }
  0xde   :  { %v111_v13 = vadd.f32 %v166_v11, %v29_v9  ;;  %v94_v14 = vpop.f32.mrb[1].mxu0 }
  0xdf   :  { %v109_v16 = vadd.f32 %v94_v14, %v27_v10  ;;  %v167_v17 = vpop.f32.mrb[2].mxu0 }
  0xe0   :  { %115 = vst.msk [vmem:[#allocation2 + $0x10] sm:$0xff] %vm22_vm0, %v111_v13  ;;  %v112_v18 = vadd.f32 %v167_v17, %v30_v12  ;;  %v97_v19 = vpop.f32.mrb[3].mxu0 }
  0xe1   :  { %113 = vst.msk [vmem:[#allocation2] sm:$0xff] %vm22_vm0, %v109_v16  ;;  %v110_v20 = vadd.f32 %v97_v19, %v28_v15 }
  0xe2   :  { %116 = vst.msk [vmem:[#allocation2 + $0x18] sm:$0xff] %vm22_vm0, %v112_v18 }
  0xe3   :  { %114 = vst.msk [vmem:[#allocation2 + $0x8] sm:$0xff] %vm22_vm0, %v110_v20 }
  0xe7   :  { %v122_v22 = vld [vmem:[#allocation2 + $0x10] sm:$0xff] }
  0xe8   :  { %v133_v24 = vadd.f32 %v155_v21, %v122_v22  ;;  %v120_v25 = vld [vmem:[#allocation2] sm:$0xff] }
  0xe9   :  { %v131_v27 = vadd.f32 %v155_v21, %v120_v25  ;;  %v123_v28 = vld [vmem:[#allocation2 + $0x18] sm:$0xff] }
  0xea   :  { %v141_v30 = vadd.f32 %v137_v23, %v133_v24  ;;  %v134_v31 = vadd.f32 %v155_v21, %v123_v28  ;;  %v121_v32 = vld [vmem:[#allocation2 + $0x8] sm:$0xff] }
  0xeb   :  { %v139_v34 = vadd.f32 %v135_v26, %v131_v27  ;;  %v132_v35 = vadd.f32 %v155_v21, %v121_v32 }
  0xec   :  { %145 = vst.msk [vmem:[%s260_s4 + $0x10] sm:$0xff] %vm22_vm0, %v141_v30  ;;  %v142_v36 = vadd.f32 %v138_v29, %v134_v31 }
  0xed   :  { %143 = vst.msk [vmem:[%s260_s4] sm:$0xff] %vm22_vm0, %v139_v34  ;;  %v140_v37 = vadd.f32 %v136_v33, %v132_v35 }
  0xee   :  { %146 = vst.msk [vmem:[%s260_s4 + $0x18] sm:$0xff] %vm22_vm0, %v142_v36 }
  0xef   :  { %144 = vst.msk [vmem:[%s260_s4 + $0x8] sm:$0xff] %vm22_vm0, %v140_v37 }

// kernel: _lambda_.39
= control target key start
LH: loop header
LB: loop body
LE: loop exit
PB: predicated region body
PF: predicated region fallthrough
CT: control target
= control target key end

     0   :  { %vm19_vm0 = vcmask 261120   ;;  %v160_v1 = vmov 0.0   ;;  %s228_s1 = inlined_call_operand.vmem [shape: bf16[32,32], index: 1, kind: input, shape index: {}]   ;;  %s229_s0 = inlined_call_operand.vmem [shape: f32[32,32], index: 0, kind: input, shape index: {}]   ;;  %s230_s2 = inlined_call_operand.vmem [shape: f32[1,32], index: 2, kind: input, shape index: {}]   ;;  %s231_s3 = inlined_call_operand.vmem [shape: f32[32,32], index: 3, kind: output, shape index: {}]  }
   0x1   :  { %v158_v0 = vld [vmem:[%s228_s1] sm:$0xff]   ;;  %22 = vst.msk [vmem:[#allocation2 + $0x10] sm:$0xff] %vm19_vm0, %v160_v1  ;;  %20 = vst.msk [vmem:[#allocation2] sm:$0xff] %vm19_vm0, %v160_v1  ;;  %v159_v2 = vld [vmem:[%s228_s1 + $0x8] sm:$0xff]  }
   0x2   :  { %21 = vst.msk [vmem:[#allocation2 + $0x8] sm:$0xff] %vm19_vm0, %v160_v1  ;;  %23 = vst.msk [vmem:[#allocation2 + $0x18] sm:$0xff] %vm19_vm0, %v160_v1  ;;  %149 = vmatprep.subr.bf16.mxu0 %v158_v0  ;;  %v28_v3 = vld [vmem:[%s229_s0] sm:$0xff]  ;;  %v29_v4 = vld [vmem:[%s229_s0 + $0x8] sm:$0xff] }
   0x3   :  { %150 = vmatpush3.bf16.msra.mxu0 %v158_v0  ;;  %v32_v5 = vpack.c.bf16 %v29_v4, %v28_v3  ;;  %v30_v6 = vld [vmem:[%s229_s0 + $0x10] sm:$0xff]  ;;  %v31_v7 = vld [vmem:[%s229_s0 + $0x18] sm:$0xff]  ;;  %v144_v21 = vld [vmem:[%s230_s2] ss:$0 sm:$0xff] }
   0x4   :  { %151 = vmatprep.subr.bf16.mxu0 %v159_v2  ;;  %v33_v8 = vpack.c.bf16 %v31_v7, %v30_v6 }
   0x5   :  { %153 = vmatprep.mubr.msk.bf16.mxu0 %vm19_vm0, %v32_v5 }
   0x7   :  { %152 = vmatpush3.bf16.msra.mxu0 %v159_v2 }
   0x8   :  { %v26_v9 = vld [vmem:[#allocation2 + $0x10] sm:$0xff]  ;;  %v24_v10 = vld [vmem:[#allocation2] sm:$0xff] }
   0x9   :  { %v27_v12 = vld [vmem:[#allocation2 + $0x18] sm:$0xff]  ;;  %v25_v15 = vld [vmem:[#allocation2 + $0x8] sm:$0xff] }
   0xa   :  { %154 = vmatmul.mubr.msk.bf16.vlgmr.msra.gmra.mrb[0].mxu0 %vm19_vm0, %v33_v8 }
  0xdd   :  { %v155_v11 = vpop.f32.mrb[0].mxu0 }
  0xde   :  { %v108_v13 = vadd.f32 %v155_v11, %v26_v9  ;;  %v91_v14 = vpop.f32.mrb[1].mxu0 }
  0xdf   :  { %v106_v16 = vadd.f32 %v91_v14, %v24_v10  ;;  %v156_v17 = vpop.f32.mrb[2].mxu0 }
  0xe0   :  { %112 = vst.msk [vmem:[#allocation2 + $0x10] sm:$0xff] %vm19_vm0, %v108_v13  ;;  %v109_v18 = vadd.f32 %v156_v17, %v27_v12  ;;  %v94_v19 = vpop.f32.mrb[3].mxu0 }
  0xe1   :  { %110 = vst.msk [vmem:[#allocation2] sm:$0xff] %vm19_vm0, %v106_v16  ;;  %v107_v20 = vadd.f32 %v94_v19, %v25_v15 }
  0xe2   :  { %113 = vst.msk [vmem:[#allocation2 + $0x18] sm:$0xff] %vm19_vm0, %v109_v18 }
  0xe3   :  { %111 = vst.msk [vmem:[#allocation2 + $0x8] sm:$0xff] %vm19_vm0, %v107_v20 }
  0xe7   :  { %v119_v22 = vld [vmem:[#allocation2 + $0x10] sm:$0xff] }
  0xe8   :  { %v130_v23 = vadd.f32 %v144_v21, %v119_v22  ;;  %v117_v24 = vld [vmem:[#allocation2] sm:$0xff] }
  0xe9   :  { %v128_v25 = vadd.f32 %v144_v21, %v117_v24  ;;  %v120_v26 = vld [vmem:[#allocation2 + $0x18] sm:$0xff] }
  0xea   :  { %134 = vst.msk [vmem:[%s231_s3 + $0x10] sm:$0xff] %vm19_vm0, %v130_v23  ;;  %v131_v27 = vadd.f32 %v144_v21, %v120_v26  ;;  %v118_v28 = vld [vmem:[#allocation2 + $0x8] sm:$0xff] }
  0xeb   :  { %132 = vst.msk [vmem:[%s231_s3] sm:$0xff] %vm19_vm0, %v128_v25  ;;  %v129_v29 = vadd.f32 %v144_v21, %v118_v28 }
  0xec   :  { %135 = vst.msk [vmem:[%s231_s3 + $0x18] sm:$0xff] %vm19_vm0, %v131_v27 }
  0xed   :  { %133 = vst.msk [vmem:[%s231_s3 + $0x8] sm:$0xff] %vm19_vm0, %v129_v29 }

// kernel: _lambda_.28
= control target key start
LH: loop header
LB: loop body
LE: loop exit
PB: predicated region body
PF: predicated region fallthrough
CT: control target
= control target key end

     0   :  { %9 = vsyncpa [#allocation3], 0  ;;  %s628_s0 = inlined_call_operand.vmem [shape: f32[16,16], index: 0, kind: input, shape index: {}]   ;;  %s629_s1 = inlined_call_operand.vmem [shape: f32[2,16,32], index: 1, kind: input, shape index: {}]   ;;  %s630_s2 = inlined_call_operand.vmem [shape: f32[2,16,32], index: 2, kind: output, shape index: {0}]   ;;  %s631_s3 = inlined_call_operand.hbm [shape: f32[2,16,32], index: 3, kind: output, shape index: {1}]  }
   0x1   :  { %11 = vsyncpa [#allocation3 + $0x1], 0  ;;  %s508_s12 = smov 0   ;;  %s510_s13 = smov 0  }
   0x2   :  { %s512_s14 = smov 0   ;;  %s514_s15 = smov 0  }
   0x3 LB: > { %s529_s16 = sadd.s32 4294967295, %s481_s15   ;;  %s350_s17 = sadd.s32 4294967294, %s481_s15   ;;  %s481_s15 = sphi %s514_s15, %s637_s15   ;;  %s477_s14 = sphi %s512_s14, %s636_s14   ;;  %s473_s13 = sphi %s510_s13, %s635_s13   ;;  %s469_s12 = sphi %s508_s12, %s634_s12  }
   0x4   : > { %s533_s18 = sadd.s32 1, %s481_s15   ;;  %s97_s19 = sadd.s32 1, %s477_s14 }
   0x5   : > { %s94_s20 = ssub.s32 %s481_s15, %s533_s18  ;;  %p107_p0 = scmp.ne.s32.totalorder %s477_s14, %s473_s13 }
   0x6   : > { %p95_p1 = scmp.eq.s32.totalorder %s94_s20, 0  ;;  %p108_p2 = scmp.eq.s32.totalorder %s529_s16, 1 }
   0x7   : > { %p113_p3 = scmp.ne.s32.totalorder %s473_s13, %s469_s12  ;;  %p114_p4 = scmp.eq.s32.totalorder %s350_s17, 1 }
   0x8   : > { %s544_s21 = scalar_select %p95_p1, %s477_s14, %s97_s19  }
   0x9   : > { %p546_p5 = por %p108_p2, %p107_p0  ;;  %p550_p6 = por %p114_p4, %p113_p3 }
   0xa   : > { %p353_p7 = scmp.ge.s32.totalorder %s481_s15, 1  ;;  %p143_p8 = scmp.lt.s32.totalorder %s481_s15, 3 }
   0xc   : > { %p144_p9 = pnand %p353_p7, %p143_p8 }
   0xd   : > { %p172_p10 = scmp.lt.s32.totalorder (!%p144_p9), %s529_s16, 1  ;;  %v483_v0 = vmov (!%p144_p9), 0.0   ;;  %vm484_vm0 = vmmov (!%p144_p9), 0   ;;  %v183_v1 = vld [vmem:[%s628_s0] sm:$0xff] (!%p144_p9)  ;;  %v184_v2 = vld [vmem:[%s628_s0 + $0x8] sm:$0xff] (!%p144_p9)  ;;  %vm189_vm1 = vcmask (!%p144_p9), 130048  }
   0xe   : > { %147 = sbr.rel (%p144_p9) target bundleno = 260 (0x104), region = 28  ;;  %370 = vmatprep.subr.bf16.mxu0 (!%p144_p9), %v483_v0  ;;  %372 = vmatprep.mubr.msk.bf16.mxu0 (!%p144_p9), %vm484_vm0, %v483_v0  ;;  %v185_v6 = vpack.c.bf16 (!%p144_p9), %v184_v2, %v183_v1  ;;  %s169_s6 = sand.u32 (!%p144_p9), 1, %s473_s13   ;;  %vm234_vm2 = vcmask (!%p144_p9), 261120  }
   0xf   : > { %s354_s7 = sshll.u32 (!%p144_p9), %s169_s6, 4  ;;  %s367_s10 = sshll.u32 (!%p144_p9), %s529_s16, 8 }
  0x10   : > { %s171_s8 = scalar_lea.vmem (!%p144_p9), [#allocation2], %s354_s7  ;;  %s579_s26 = scalar_lea.hbm (!%p144_p9), %s631_s3, %s367_s10 }
  0x11   : > { %s263_s9 = sshll.u32 (!%p144_p9), %s171_s8, 4  ;;  %s485_s27 = smov (!%p144_p9), [#allocation2]   ;;  %s574_s9 = int_to_ptr.vmem [resolvable:$true] %s263_s9 }
  0x15   : > { %s173_s24 = scalar_select %p172_p10, %s529_s16, 1 }
  0x16   : > { %s585_s16 = scalar_lea.sflag [#allocation3], %s169_s6 }
  0x17   : > { %s365_s25 = sshll.u32 %s173_s24, 4 }
  0x18   : > { %s176_s28 = scalar_lea.vmem %s629_s1, %s365_s25  ;;  %s572_s19 = scalar_lea.vmem %s630_s2, %s365_s25 }
  0x19   : > { %v186_v3 = vld [vmem:[%s176_s28] sm:$0xff]  ;;  %v187_v4 = vld [vmem:[%s176_s28 + $0x8] sm:$0xff]  ;;  %s419_s25 = scalar_lea.vmem %s574_s9, 256  ;;  %s423_s28 = sshll.u32 %s485_s27, 4  ;;  %s424_s28 = int_to_ptr.vmem [resolvable:$false] %s423_s28 }
  0x1a   : > { %v188_v5 = vpack.c.bf16 %v187_v4, %v186_v3  ;;  %p420_p11 = scmp.ne.s32.totalorder %s574_s9, %s419_s25  ;;  %s425_s29 = scalar_lea.vmem %s424_s28, 512 }
  0x1b   : > { %p426_p0 = scmp.lt.s32.totalorder %s574_s9, %s424_s28  ;;  %p427_p1 = scmp.lt.s32.totalorder %s425_s29, %s419_s25 }
  0x1c   : > { %371 = vmatpush3.bf16.msra.mxu0 %v188_v5  ;;  %p421_p12 = pnand %p420_p11, %p546_p5 }
  0x1d   : > { %p428_p2 = por %p427_p1, %p426_p0 }
  0x1e   : > { %p422_p13 = pneg %p421_p12 }
  0x1f   : > { %373 = vmatmul.mubr.msk.bf16.vlgmr.msra.gmra.mrb[0].mxu0 %vm189_vm1, %v185_v6 }
  0x20   : > { %p429_p3 = pnand %p428_p2, %p422_p13 }
  0xf2   : > { %v227_v7 = vpop.f32.mrb[0].mxu0 }
  0xf3   : > { %235 = vst.msk [vmem:[%s171_s8] sm:$0xff] %vm234_vm2, %v227_v7  ;;  %v237_v8 = vsub.f32 %v186_v3, %v227_v7  ;;  %v374_v9 = vpop.f32.mrb[1].mxu0 }
  0xf4   : > { %v230_v10 = vpop.f32.mrb[2].mxu0 }
  0xf5   : > { %239 = vst.msk [vmem:[%s572_s19] sm:$0xff] %vm234_vm2, %v237_v8  ;;  %236 = vst.msk [vmem:[%s171_s8 + $0x8] sm:$0xff] %vm234_vm2, %v230_v10  ;;  %v238_v11 = vsub.f32 %v187_v4, %v230_v10  ;;  %v375_v12 = vpop.f32.mrb[3].mxu0 }
  0xf6   : > { %432 = shalt.err (!%p429_p3)
}
  0xf7   : > { %s433_s30 = scalar_lea.hbm %s579_s26, 256  ;;  %s437_s6 = scalar_lea.hbm %s631_s3, 512 }
  0xf8   : > { %p434_p4 = scmp.ne.s32.totalorder %s579_s26, %s433_s30  ;;  %p438_p9 = scmp.lt.u32.totalorder %s579_s26, %s631_s3 }
  0xf9   : > { %p439_p10 = scmp.lt.u32.totalorder %s437_s6, %s433_s30  ;;  %p441_p12 = scmp.lt.u32.totalorder %s433_s30, %s579_s26 }
  0xfa   : > { %p435_p7 = pnand %p434_p4, %p546_p5 }
  0xfb   : > { %p440_p11 = por %p439_p10, %p438_p9 }
  0xfc   : > { %p436_p8 = pneg %p435_p7 }
  0xfd   : > { %p442_p13 = por %p441_p12, %p440_p11 }
  0xff   : > { %p443_p0 = pnand %p442_p13, %p436_p8 }
 0x101   : > { %446 = shalt.err (!%p443_p0)
}
 0x102   : > { %s486_s10 = smov 128   ;;  %s487_s11 = smov 8   ;;  %240 = vst.msk [vmem:[%s572_s19 + $0x8] sm:$0xff] %vm234_vm2, %v238_v11 }
 0x103   : > { %376 = dma.vmem_to_hbm [thread:$0]  (%p546_p5), %s574_s9, 256, %s579_s26, %s585_s16, %s486_s10, %s486_s10, %s487_s11  }
 0x104 PF: > { %p382_p1 = scmp.ge.s32.totalorder %s481_s15, 2  ;;  %s286_s17 = sand.u32 1, %s469_s12  }
 0x105   : > { %s287_s20 = scalar_lea.sflag [#allocation3], %s286_s17 }
 0x106   : > { %p379_p2 = pnand %p382_p1, %p550_p6 }
 0x108   : > { %464 = dma.done.wait (!%p379_p2), %s287_s20, 256  }
 0x109   : > { %466 = vsyncadd (!%p379_p2), %s287_s20, 4294967040  ;;  %p14_p3 = scmp.ge.s32.totalorder %s533_s18, 4   ;;  %s634_s12 = smov %s473_s13 }
 0x10a   : > { %s635_s13 = smov %s477_s14  ;;  %s636_s14 = smov %s544_s21 }
 0x10b   : > { %s637_s15 = smov %s533_s18  ;;  %16 = sbr.rel (!%p14_p3) target bundleno = 3 (0x3), region = 75 }
 0x112   :  { %292 = vsyncpa [#allocation3], 1 }
 0x113   :  { %294 = vsyncpa [#allocation3 + $0x1], 1 }

// kernel: _lambda_.29
= control target key start
LH: loop header
LB: loop body
LE: loop exit
PB: predicated region body
PF: predicated region fallthrough
CT: control target
= control target key end

     0   :  { %vm37_vm0 = vcmask 261120   ;;  %vm131_vm1 = vcmask 523264   ;;  %s313_s1 = inlined_call_operand.vmem [shape: bf16[32,64], index: 1, kind: input, shape index: {}]   ;;  %s314_s0 = inlined_call_operand.vmem [shape: f32[32,32], index: 0, kind: input, shape index: {}]   ;;  %s315_s2 = inlined_call_operand.vmem [shape: bf16[64,32], index: 2, kind: input, shape index: {}]   ;;  %s316_s3 = inlined_call_operand.vmem [shape: f32[32,32], index: 3, kind: output, shape index: {}]  }
   0x1   :  { %v239_v0 = vld [vmem:[%s313_s1] sm:$0xff]   ;;  %v240_v1 = vld [vmem:[%s313_s1 + $0x8] sm:$0xff]   ;;  %v17_v4 = vld [vmem:[%s314_s0 + $0x10] sm:$0xff] }
   0x2   :  { %219 = vmatprep.subr.bf16.mxu0 %v239_v0  ;;  %v15_v2 = vld [vmem:[%s314_s0] sm:$0xff]  ;;  %v16_v3 = vld [vmem:[%s314_s0 + $0x8] sm:$0xff]  ;;  %v18_v6 = vld [vmem:[%s314_s0 + $0x18] sm:$0xff] }
   0x3   :  { %220 = vmatpush3.bf16.msra.mxu0 %v239_v0  ;;  %v19_v5 = vpack.c.bf16 %v16_v3, %v15_v2  ;;  %v241_v7 = vld [vmem:[%s315_s2] sm:$0xff]   ;;  %v242_v8 = vld [vmem:[%s315_s2 + $0x8] sm:$0xff]   ;;  %v20_v9 = vpack.c.bf16 %v18_v6, %v17_v4  ;;  %v243_v10 = vld [vmem:[%s315_s2 + $0x10] sm:$0xff]  }
   0x4   :  { %221 = vmatprep.subr.bf16.mxu0 %v240_v1  ;;  %227 = vmatprep.subr.bf16.mxu1 %v241_v7  ;;  %v244_v11 = vld [vmem:[%s315_s2 + $0x18] sm:$0xff]  }
   0x5   :  { %223 = vmatprep.mubr.msk.bf16.mxu0 %vm37_vm0, %v19_v5  ;;  %228 = vmatpush3.bf16.msra.mxu1 %v241_v7 }
   0x6   :  { %229 = vmatprep.subr.bf16.mxu1 %v242_v8 }
   0x7   :  { %222 = vmatpush3.bf16.msra.mxu0 %v240_v1 }
   0x9   :  { %230 = vmatpush3.bf16.msra.mxu1 %v242_v8 }
   0xa   :  { %224 = vmatmul.mubr.msk.bf16.vlgmr.msra.gmra.mrb[0].mxu0 %vm37_vm0, %v20_v9  ;;  %231 = vmatprep.subr.bf16.mxu1 %v243_v10 }
   0xd   :  { %232 = vmatpush3.bf16.msra.mxu1 %v243_v10 }
   0xe   :  { %233 = vmatprep.subr.bf16.mxu1 %v244_v11 }
  0x11   :  { %234 = vmatpush3.bf16.msra.mxu1 %v244_v11 }
  0xdd   :  { %v225_v12 = vpop.f32.mrb[0].mxu0 }
  0xde   :  { %v78_v13 = vpop.f32.mrb[1].mxu0  ;;  %v95_v15 = vmax.f32 %v225_v12, 0.0 }
  0xdf   :  { %v226_v14 = vpop.f32.mrb[2].mxu0  ;;  %v93_v18 = vmax.f32 %v78_v13, 0.0 }
  0xe0   :  { %v96_v16 = vmax.f32 %v226_v14, 0.0  ;;  %v81_v17 = vpop.f32.mrb[3].mxu0 }
  0xe1   :  { %v94_v19 = vmax.f32 %v81_v17, 0.0 }
  0xe2   :  { %v98_v20 = vpack.c.bf16 %v96_v16, %v95_v15 }
  0xe3   :  { %v97_v21 = vpack.c.bf16 %v94_v19, %v93_v18 }
  0xe5   :  { %235 = vmatprep.mubr.msk.bf16.mxu1 %vm131_vm1, %v97_v21 }
  0xe6   :  { %236 = vmatmul.mubr.msk.bf16.vlgmr.msra.gmra.mrb[0].mxu1 %vm131_vm1, %v98_v20 }
 0x1b9   :  { %v237_v22 = vpop.f32.mrb[0].mxu1 }
 0x1ba   :  { %v189_v23 = vadd.f32 %v237_v22, %v17_v4  ;;  %v172_v24 = vpop.f32.mrb[1].mxu1 }
 0x1bb   :  { %v187_v25 = vadd.f32 %v172_v24, %v15_v2  ;;  %v238_v26 = vpop.f32.mrb[2].mxu1 }
 0x1bc   :  { %193 = vst.msk [vmem:[%s316_s3 + $0x10] sm:$0xff] %vm37_vm0, %v189_v23  ;;  %v190_v27 = vadd.f32 %v238_v26, %v18_v6  ;;  %v175_v28 = vpop.f32.mrb[3].mxu1 }
 0x1bd   :  { %191 = vst.msk [vmem:[%s316_s3] sm:$0xff] %vm37_vm0, %v187_v25  ;;  %v188_v29 = vadd.f32 %v175_v28, %v16_v3 }
 0x1be   :  { %194 = vst.msk [vmem:[%s316_s3 + $0x18] sm:$0xff] %vm37_vm0, %v190_v27 }
 0x1bf   :  { %192 = vst.msk [vmem:[%s316_s3 + $0x8] sm:$0xff] %vm37_vm0, %v188_v29 }

// kernel: _lambda_.32
= control target key start
LH: loop header
LB: loop body
LE: loop exit
PB: predicated region body
PF: predicated region fallthrough
CT: control target
= control target key end

     0   :  { %vm19_vm0 = vcmask 523264   ;;  %v161_v1 = vmov 0.0   ;;  %vm50_vm1 = vcmask 261120   ;;  %s227_s1 = inlined_call_operand.vmem [shape: bf16[32,64], index: 1, kind: input, shape index: {}]   ;;  %s228_s0 = inlined_call_operand.vmem [shape: f32[32,32], index: 0, kind: input, shape index: {}]   ;;  %s229_s2 = inlined_call_operand.vmem [shape: f32[1,64], index: 2, kind: input, shape index: {}]   ;;  %s230_s3 = inlined_call_operand.vmem [shape: f32[32,64], index: 3, kind: output, shape index: {}]  }
   0x1   :  { %v159_v0 = vld [vmem:[%s227_s1] sm:$0xff]   ;;  %22 = vst.msk [vmem:[#allocation2 + $0x10] sm:$0xff] %vm19_vm0, %v161_v1  ;;  %20 = vst.msk [vmem:[#allocation2] sm:$0xff] %vm19_vm0, %v161_v1  ;;  %v160_v2 = vld [vmem:[%s227_s1 + $0x8] sm:$0xff]  }
   0x2   :  { %21 = vst.msk [vmem:[#allocation2 + $0x8] sm:$0xff] %vm19_vm0, %v161_v1  ;;  %23 = vst.msk [vmem:[#allocation2 + $0x18] sm:$0xff] %vm19_vm0, %v161_v1  ;;  %150 = vmatprep.subr.bf16.mxu0 %v159_v0  ;;  %v28_v3 = vld [vmem:[%s228_s0] sm:$0xff]  ;;  %v29_v4 = vld [vmem:[%s228_s0 + $0x8] sm:$0xff] }
   0x3   :  { %151 = vmatpush3.bf16.msra.mxu0 %v159_v0  ;;  %v32_v5 = vpack.c.bf16 %v29_v4, %v28_v3  ;;  %v30_v6 = vld [vmem:[%s228_s0 + $0x10] sm:$0xff]  ;;  %v31_v7 = vld [vmem:[%s228_s0 + $0x18] sm:$0xff]  ;;  %v145_v21 = vld [vmem:[%s229_s2] ss:$0 sm:$0xff] }
   0x4   :  { %152 = vmatprep.subr.bf16.mxu0 %v160_v2  ;;  %v33_v8 = vpack.c.bf16 %v31_v7, %v30_v6 }
   0x5   :  { %154 = vmatprep.mubr.msk.bf16.mxu0 %vm50_vm1, %v32_v5 }
   0x7   :  { %153 = vmatpush3.bf16.msra.mxu0 %v160_v2 }
   0x8   :  { %v26_v9 = vld [vmem:[#allocation2 + $0x10] sm:$0xff]  ;;  %v24_v10 = vld [vmem:[#allocation2] sm:$0xff] }
   0x9   :  { %v27_v12 = vld [vmem:[#allocation2 + $0x18] sm:$0xff]  ;;  %v25_v15 = vld [vmem:[#allocation2 + $0x8] sm:$0xff] }
   0xa   :  { %155 = vmatmul.mubr.msk.bf16.vlgmr.msra.gmra.mrb[0].mxu0 %vm50_vm1, %v33_v8 }
  0xdd   :  { %v156_v11 = vpop.f32.mrb[0].mxu0 }
  0xde   :  { %v108_v13 = vadd.f32 %v156_v11, %v26_v9  ;;  %v91_v14 = vpop.f32.mrb[1].mxu0 }
  0xdf   :  { %v106_v16 = vadd.f32 %v91_v14, %v24_v10  ;;  %v157_v17 = vpop.f32.mrb[2].mxu0 }
  0xe0   :  { %113 = vst.msk [vmem:[#allocation2 + $0x10] sm:$0xff] %vm19_vm0, %v108_v13  ;;  %v109_v18 = vadd.f32 %v157_v17, %v27_v12  ;;  %v94_v19 = vpop.f32.mrb[3].mxu0 }
  0xe1   :  { %111 = vst.msk [vmem:[#allocation2] sm:$0xff] %vm19_vm0, %v106_v16  ;;  %v107_v20 = vadd.f32 %v94_v19, %v25_v15 }
  0xe2   :  { %114 = vst.msk [vmem:[#allocation2 + $0x18] sm:$0xff] %vm19_vm0, %v109_v18 }
  0xe3   :  { %112 = vst.msk [vmem:[#allocation2 + $0x8] sm:$0xff] %vm19_vm0, %v107_v20 }
  0xe7   :  { %v120_v22 = vld [vmem:[#allocation2 + $0x10] sm:$0xff] }
  0xe8   :  { %v131_v23 = vadd.f32 %v145_v21, %v120_v22  ;;  %v118_v24 = vld [vmem:[#allocation2] sm:$0xff] }
  0xe9   :  { %v129_v25 = vadd.f32 %v145_v21, %v118_v24  ;;  %v121_v26 = vld [vmem:[#allocation2 + $0x18] sm:$0xff] }
  0xea   :  { %135 = vst.msk [vmem:[%s230_s3 + $0x10] sm:$0xff] %vm19_vm0, %v131_v23  ;;  %v132_v27 = vadd.f32 %v145_v21, %v121_v26  ;;  %v119_v28 = vld [vmem:[#allocation2 + $0x8] sm:$0xff] }
  0xeb   :  { %133 = vst.msk [vmem:[%s230_s3] sm:$0xff] %vm19_vm0, %v129_v25  ;;  %v130_v29 = vadd.f32 %v145_v21, %v119_v28 }
  0xec   :  { %136 = vst.msk [vmem:[%s230_s3 + $0x18] sm:$0xff] %vm19_vm0, %v132_v27 }
  0xed   :  { %134 = vst.msk [vmem:[%s230_s3 + $0x8] sm:$0xff] %vm19_vm0, %v130_v29 }

// kernel: _lambda_.31
= control target key start
LH: loop header
LB: loop body
LE: loop exit
PB: predicated region body
PF: predicated region fallthrough
CT: control target
= control target key end

     0   :  { %s344_s12 = smov 0   ;;  %s382_s0 = inlined_call_operand.vmem [shape: f32[2,16,32], index: 0, kind: input, shape index: {}]   ;;  %s383_s1 = inlined_call_operand.vmem [shape: f32[1,32], index: 1, kind: input, shape index: {}]   ;;  %s384_s2 = inlined_call_operand.vmem [shape: f32[1,32], index: 2, kind: input, shape index: {}]   ;;  %s385_s3 = inlined_call_operand.vmem [shape: f32[2,16,32], index: 3, kind: output, shape index: {}]  }
   0x1 LB: > { %s289_s13 = sadd.s32 4294967295, %s322_s12   ;;  %p293_p0 = scmp.ge.s32.totalorder %s322_s12, 1  ;;  %s322_s12 = sphi %s344_s12, %s13_s12  }
   0x2   : > { %p137_p1 = scmp.lt.s32.totalorder %s322_s12, 3 }
   0x4   : > { %p138_p2 = pnand %p293_p0, %p137_p1 }
   0x5   : > { %p161_p3 = scmp.lt.s32.totalorder (!%p138_p2), %s289_s13, 1  ;;  %vm173_vm0 = vcmask (!%p138_p2), 261120   ;;  %v298_v21 = vld [vmem:[%s383_s1] ss:$0 sm:$0xff] (!%p138_p2) }
   0x6   : > { %141 = sbr.rel (%p138_p2) target bundleno = 354 (0x162), region = 32  ;;  %v299_v25 = vld [vmem:[%s384_s2] ss:$0 sm:$0xff] (!%p138_p2) }
   0xd   : > { %s387_s13 = smov (!%p161_p3, %s289_s13), 1 }
   0xe   : > { %s302_s14 = sshll.u32 %s387_s13, 4 }
   0xf   : > { %s165_s17 = scalar_lea.vmem %s382_s0, %s302_s14  ;;  %s170_s24 = scalar_lea.vmem %s385_s3, %s302_s14 }
  0x10   : > { %v171_v0 = vld [vmem:[%s165_s17] sm:$0xff]  ;;  %v172_v1 = vld [vmem:[%s165_s17 + $0x8] sm:$0xff] }
  0x11   : > { %v174_v2 = vsel %vm173_vm0, %v171_v0, 0.0  ;;  %v177_v3 = vsel %vm173_vm0, %v172_v1, 0.0 }
  0x12   : > { %175 = vadd.xlane.f32.xlu0 %v174_v2 }
  0x16   : > { %178 = vadd.xlane.f32.xlu0 %v177_v3 }
  0x9f   : > { %v176_v4 = vpop.xlane.xlu0 %175 }
  0xa0   : > { %v181_v5 = vmul.f32 0.03125, %v176_v4 }
  0xa2   : > { %v183_v6 = vsub.f32 %v171_v0, %v181_v5 }
  0xa3   : > { %v179_v7 = vpop.xlane.xlu0 %178 }
  0xa4   : > { %v182_v8 = vmul.f32 0.03125, %v179_v7  ;;  %v185_v9 = vmul.f32 %v183_v6, %v183_v6 }
  0xa6   : > { %v184_v10 = vsub.f32 %v172_v1, %v182_v8  ;;  %v187_v11 = vsel %vm173_vm0, %v185_v9, 0.0 }
  0xa7   : > { %188 = vadd.xlane.f32.xlu1 %v187_v11 }
  0xa8   : > { %v186_v12 = vmul.f32 %v184_v10, %v184_v10 }
  0xaa   : > { %v190_v13 = vsel %vm173_vm0, %v186_v12, 0.0 }
  0xab   : > { %191 = vadd.xlane.f32.xlu1 %v190_v13 }
 0x134   : > { %v189_v14 = vpop.xlane.xlu1 %188 }
 0x135   : > { %v193_v15 = vmul.f32 0.03125, %v189_v14 }
 0x137   : > { %v195_v16 = vadd.f32 1e-05, %v193_v15 }
 0x138   : > { %v192_v17 = vpop.xlane.xlu1 %191 }
 0x139   : > { %312 = vrsqrt.f32 %v195_v16  ;;  %v194_v18 = vmul.f32 0.03125, %v192_v17 }
 0x13b   : > { %v196_v19 = vadd.f32 1e-05, %v194_v18 }
 0x13d   : > { %314 = vrsqrt.f32 %v196_v19 }
 0x143   : > { %v313_v20 = vpop.eup %312 }
 0x144   : > { %v199_v22 = vmul.f32 %v313_v20, %v183_v6 }
 0x146   : > { %v208_v23 = vmul.f32 %v298_v21, %v199_v22 }
 0x147   : > { %v315_v24 = vpop.eup %314 }
 0x148   : > { %v200_v26 = vmul.f32 %v315_v24, %v184_v10  ;;  %v217_v27 = vadd.f32 %v299_v25, %v208_v23 }
 0x14a   : > { %v209_v28 = vmul.f32 %v298_v21, %v200_v26  ;;  %v219_v30 = vsel %vm173_vm0, %v217_v27, 0.0 }
 0x14c   : > { %v218_v29 = vadd.f32 %v299_v25, %v209_v28 }
 0x14e   : > { %v220_v31 = vsel %vm173_vm0, %v218_v29, 0.0 }
 0x14f   : > { %v221_v32 = vadd.f32 %v220_v31, %v219_v30 }
 0x151   : > { %v222_v33 = vrot.slane %v221_v32, 4 }
 0x153   : > { %v223_v34 = vadd.f32 %v222_v33, %v221_v32 }
 0x155   : > { %v224_v35 = vrot.slane %v223_v34, 2 }
 0x157   : > { %v225_v36 = vadd.f32 %v224_v35, %v223_v34 }
 0x159   : > { %v226_v37 = vrot.slane %v225_v36, 1 }
 0x15b   : > { %v227_v38 = vadd.f32 %v226_v37, %v225_v36 }
 0x15d   : > { %v229_v39 = vmul.f32 0.0625, %v227_v38 }
 0x15f   : > { %v230_v40 = vsub.f32 %v217_v27, %v229_v39  ;;  %v231_v41 = vsub.f32 %v218_v29, %v229_v39 }
 0x161   : > { %232 = vst.msk [vmem:[%s170_s24] sm:$0xff] %vm173_vm0, %v230_v40  ;;  %233 = vst.msk [vmem:[%s170_s24 + $0x8] sm:$0xff] %vm173_vm0, %v231_v41 }
 0x162 PF: > { %s13_s12 = sadd.s32 1, %s322_s12  }
 0x163   : > { %p10_p4 = scmp.ge.s32.totalorder %s13_s12, 4  }
 0x165   :  { %12 = sbr.rel (!%p10_p4) target bundleno = 1 (0x1), region = 62 }

// kernel: _lambda_.47
= control target key start
LH: loop header
LB: loop body
LE: loop exit
PB: predicated region body
PF: predicated region fallthrough
CT: control target
= control target key end

     0   :  { %vm22_vm0 = vcmask 31744   ;;  %v172_v1 = vmov 0.0   ;;  %vm53_vm1 = vcmask 261120   ;;  %s255_s1 = inlined_call_operand.vmem [shape: bf16[32,4], index: 1, kind: input, shape index: {}]   ;;  %s256_s0 = inlined_call_operand.vmem [shape: f32[32,32], index: 0, kind: input, shape index: {}]   ;;  %s257_s2 = inlined_call_operand.vmem [shape: f32[1,4], index: 2, kind: input, shape index: {}]   ;;  %s258_s3 = inlined_call_operand.vmem [shape: f32[32,4], index: 3, kind: input, shape index: {}]   ;;  %s259_s4 = inlined_call_operand.vmem [shape: f32[32,4], index: 4, kind: output, shape index: {}]  }
   0x1   :  { %v170_v0 = vld [vmem:[%s255_s1] sm:$0xff]   ;;  %25 = vst.msk [vmem:[#allocation2 + $0x10] sm:$0xff] %vm22_vm0, %v172_v1  ;;  %23 = vst.msk [vmem:[#allocation2] sm:$0xff] %vm22_vm0, %v172_v1  ;;  %v171_v2 = vld [vmem:[%s255_s1 + $0x8] sm:$0xff]  }
   0x2   :  { %24 = vst.msk [vmem:[#allocation2 + $0x8] sm:$0xff] %vm22_vm0, %v172_v1  ;;  %26 = vst.msk [vmem:[#allocation2 + $0x18] sm:$0xff] %vm22_vm0, %v172_v1  ;;  %161 = vmatprep.subr.bf16.mxu0 %v170_v0  ;;  %v31_v3 = vld [vmem:[%s256_s0] sm:$0xff]  ;;  %v32_v4 = vld [vmem:[%s256_s0 + $0x8] sm:$0xff] }
   0x3   :  { %162 = vmatpush3.bf16.msra.mxu0 %v170_v0  ;;  %v35_v5 = vpack.c.bf16 %v32_v4, %v31_v3  ;;  %v33_v6 = vld [vmem:[%s256_s0 + $0x10] sm:$0xff]  ;;  %v34_v7 = vld [vmem:[%s256_s0 + $0x18] sm:$0xff]  ;;  %v156_v21 = vld [vmem:[%s257_s2] ss:$0 sm:$0xff] }
   0x4   :  { %163 = vmatprep.subr.bf16.mxu0 %v171_v2  ;;  %v36_v8 = vpack.c.bf16 %v34_v7, %v33_v6  ;;  %v138_v23 = vld [vmem:[%s258_s3 + $0x10] sm:$0xff]  ;;  %v136_v26 = vld [vmem:[%s258_s3] sm:$0xff]  ;;  %v139_v29 = vld [vmem:[%s258_s3 + $0x18] sm:$0xff] }
   0x5   :  { %165 = vmatprep.mubr.msk.bf16.mxu0 %vm53_vm1, %v35_v5  ;;  %v137_v33 = vld [vmem:[%s258_s3 + $0x8] sm:$0xff] }
   0x7   :  { %164 = vmatpush3.bf16.msra.mxu0 %v171_v2 }
   0x8   :  { %v29_v9 = vld [vmem:[#allocation2 + $0x10] sm:$0xff]  ;;  %v27_v10 = vld [vmem:[#allocation2] sm:$0xff] }
   0x9   :  { %v30_v12 = vld [vmem:[#allocation2 + $0x18] sm:$0xff]  ;;  %v28_v15 = vld [vmem:[#allocation2 + $0x8] sm:$0xff] }
   0xa   :  { %166 = vmatmul.mubr.msk.bf16.vlgmr.msra.gmra.mrb[0].mxu0 %vm53_vm1, %v36_v8 }
  0xdd   :  { %v167_v11 = vpop.f32.mrb[0].mxu0 }
  0xde   :  { %v111_v13 = vadd.f32 %v167_v11, %v29_v9  ;;  %v94_v14 = vpop.f32.mrb[1].mxu0 }
  0xdf   :  { %v109_v16 = vadd.f32 %v94_v14, %v27_v10  ;;  %v168_v17 = vpop.f32.mrb[2].mxu0 }
  0xe0   :  { %116 = vst.msk [vmem:[#allocation2 + $0x10] sm:$0xff] %vm22_vm0, %v111_v13  ;;  %v112_v18 = vadd.f32 %v168_v17, %v30_v12  ;;  %v97_v19 = vpop.f32.mrb[3].mxu0 }
  0xe1   :  { %114 = vst.msk [vmem:[#allocation2] sm:$0xff] %vm22_vm0, %v109_v16  ;;  %v110_v20 = vadd.f32 %v97_v19, %v28_v15 }
  0xe2   :  { %117 = vst.msk [vmem:[#allocation2 + $0x18] sm:$0xff] %vm22_vm0, %v112_v18 }
  0xe3   :  { %115 = vst.msk [vmem:[#allocation2 + $0x8] sm:$0xff] %vm22_vm0, %v110_v20 }
  0xe7   :  { %v123_v22 = vld [vmem:[#allocation2 + $0x10] sm:$0xff] }
  0xe8   :  { %v134_v24 = vadd.f32 %v156_v21, %v123_v22  ;;  %v121_v25 = vld [vmem:[#allocation2] sm:$0xff] }
  0xe9   :  { %v132_v27 = vadd.f32 %v156_v21, %v121_v25  ;;  %v124_v28 = vld [vmem:[#allocation2 + $0x18] sm:$0xff] }
  0xea   :  { %v142_v30 = vadd.f32 %v138_v23, %v134_v24  ;;  %v135_v31 = vadd.f32 %v156_v21, %v124_v28  ;;  %v122_v32 = vld [vmem:[#allocation2 + $0x8] sm:$0xff] }
  0xeb   :  { %v140_v34 = vadd.f32 %v136_v26, %v132_v27  ;;  %v133_v35 = vadd.f32 %v156_v21, %v122_v32 }
  0xec   :  { %146 = vst.msk [vmem:[%s259_s4 + $0x10] sm:$0xff] %vm22_vm0, %v142_v30  ;;  %v143_v36 = vadd.f32 %v139_v29, %v135_v31 }
  0xed   :  { %144 = vst.msk [vmem:[%s259_s4] sm:$0xff] %vm22_vm0, %v140_v34  ;;  %v141_v37 = vadd.f32 %v137_v33, %v133_v35 }
  0xee   :  { %147 = vst.msk [vmem:[%s259_s4 + $0x18] sm:$0xff] %vm22_vm0, %v143_v36 }
  0xef   :  { %145 = vst.msk [vmem:[%s259_s4 + $0x8] sm:$0xff] %vm22_vm0, %v141_v37 }

// kernel: _lambda_.46
= control target key start
LH: loop header
LB: loop body
LE: loop exit
PB: predicated region body
PF: predicated region fallthrough
CT: control target
= control target key end

     0   :  { %s716_s18 = smov 0   ;;  %s770_s0 = inlined_call_operand.vmem [shape: f32[2,16,32], index: 0, kind: input, shape index: {}]   ;;  %s771_s1 = inlined_call_operand.vmem [shape: f32[2,16,32], index: 1, kind: input, shape index: {}]   ;;  %s772_s2 = inlined_call_operand.vmem [shape: f32[2,16,32], index: 2, kind: input, shape index: {}]   ;;  %s773_s3 = inlined_call_operand.vmem [shape: f32[2,16,4], index: 3, kind: input, shape index: {}]   ;;  %s774_s4 = inlined_call_operand.vmem [shape: bf16[3,32,4], index: 4, kind: input, shape index: {}]   ;;  %s775_s5 = inlined_call_operand.vmem [shape: f32[2,16,4], index: 5, kind: output, shape index: {}]  }
   0x1 LB: > { %s588_s19 = sadd.s32 4294967295, %s682_s18   ;;  %p592_p0 = scmp.ge.s32.totalorder %s682_s18, 1  ;;  %s682_s18 = sphi %s716_s18, %s15_s18  }
   0x2   : > { %p217_p1 = scmp.lt.s32.totalorder %s682_s18, 3 }
   0x4   : > { %p218_p2 = pnand %p592_p0, %p217_p1 }
   0x5   : > { %v670_v0 = vld [vmem:[%s774_s4] sm:$0xff] (!%p218_p2)   ;;  %v684_v1 = vmov (!%p218_p2), 0.0   ;;  %v671_v2 = vld [vmem:[%s774_s4 + $0x8] sm:$0xff] (!%p218_p2)   ;;  %v672_v3 = vld [vmem:[%s774_s4 + $0x10] sm:$0xff] (!%p218_p2)   ;;  %vm685_vm0 = vmmov (!%p218_p2), 0   ;;  %p260_p3 = scmp.lt.s32.totalorder (!%p218_p2), %s588_s19, 1  ;;  %v372_v18 = vlaneseq (!%p218_p2) }
   0x6   : > { %221 = sbr.rel (%p218_p2) target bundleno = 252 (0xfc), region = 40  ;;  %636 = vmatprep.subr.bf16.mxu0 (!%p218_p2), %v684_v1  ;;  %644 = vmatprep.subr.bf16.mxu1 (!%p218_p2), %v684_v1  ;;  %v674_v4 = vld [vmem:[%s774_s4 + $0x18] sm:$0xff] (!%p218_p2)   ;;  %vm325_vm1 = vcmask (!%p218_p2), 261120   ;;  %v673_v15 = vld [vmem:[%s774_s4 + $0x20] sm:$0xff] (!%p218_p2)   ;;  %v675_v17 = vld [vmem:[%s774_s4 + $0x28] sm:$0xff] (!%p218_p2)   ;;  %vm494_vm4 = vcmask (!%p218_p2), 31744  }
   0x7   : > { %637 = vmatpush3.bf16.msra.mxu0 (!%p218_p2), %v670_v0  ;;  %640 = vmatprep.mubr.msk.bf16.mxu0 (!%p218_p2), %vm685_vm0, %v684_v1  ;;  %v373_v19 = vshrl.u32 (!%p218_p2), %v372_v18, 7 }
   0x8   : > { %638 = vmatprep.subr.bf16.mxu0 (!%p218_p2), %v684_v1  ;;  %648 = vmatprep.mubr.msk.bf16.mxu1 (!%p218_p2), %vm685_vm0, %v684_v1 }
   0x9   : > { %645 = vmatpush3.bf16.msra.mxu1 (!%p218_p2), %v672_v3  ;;  %vm374_vm2 = vcmp.lt.s32.totalorder (!%p218_p2), %v373_v19, 1  ;;  %vm489_vm3 = vcmp.lt.s32.totalorder (!%p218_p2), %v373_v19, 7 }
   0xa   : > { %646 = vmatprep.subr.bf16.mxu1 (!%p218_p2), %v684_v1 }
   0xb   : > { %639 = vmatpush3.bf16.msra.mxu0 (!%p218_p2), %v671_v2 }
   0xc   : > { %652 = vmatprep.subr.bf16.mxu0 (!%p218_p2), %v684_v1 }
   0xd   : > { %s777_s19 = smov (!%p260_p3, %s588_s19), 1  ;;  %647 = vmatpush3.bf16.msra.mxu1 %v674_v4 }
   0xe   : > { %s738_s28 = sshll.u32 %s777_s19, 4 }
   0xf   : > { %s264_s6 = scalar_lea.vmem %s770_s0, %s738_s28  ;;  %s269_s9 = scalar_lea.vmem %s771_s1, %s738_s28 }
  0x10   : > { %s274_s12 = scalar_lea.vmem %s772_s2, %s738_s28  ;;  %v300_v5 = vld [vmem:[%s264_s6] sm:$0xff]  ;;  %v301_v6 = vld [vmem:[%s264_s6 + $0x8] sm:$0xff]  ;;  %s279_s20 = scalar_lea.vmem %s773_s3, %s738_s28 }
  0x11   : > { %v302_v7 = vld [vmem:[%s269_s9] sm:$0xff]  ;;  %v303_v8 = vld [vmem:[%s269_s9 + $0x8] sm:$0xff]  ;;  %s284_s23 = scalar_lea.vmem %s775_s5, %s738_s28 }
  0x12   : > { %v304_v9 = vadd.f32 %v302_v7, %v300_v5  ;;  %v306_v10 = vld [vmem:[%s274_s12] sm:$0xff]  ;;  %v307_v11 = vld [vmem:[%s274_s12 + $0x8] sm:$0xff]  ;;  %v305_v12 = vadd.f32 %v303_v8, %v301_v6 }
  0x13   : > { %v311_v29 = vld [vmem:[%s279_s20] sm:$0xff]  ;;  %v312_v30 = vld [vmem:[%s279_s20 + $0x8] sm:$0xff] }
  0x14   : > { %v308_v13 = vadd.f32 %v306_v10, %v304_v9  ;;  %v309_v14 = vadd.f32 %v307_v11, %v305_v12 }
  0x16   : > { %v310_v16 = vpack.c.bf16 %v309_v14, %v308_v13 }
  0x18   : > { %641 = vmatmul.mubr.msk.bf16.vlgmr.msra.gmra.mrb[0].mxu0 %vm325_vm1, %v310_v16  ;;  %649 = vmatmul.mubr.msk.bf16.vlgmr.msra.gmra.mrb[0].mxu1 %vm325_vm1, %v310_v16 }
  0x19   : > { %653 = vmatpush3.bf16.msra.mxu0 %v673_v15  ;;  %656 = vmatprep.mubr.msk.bf16.mxu0 %vm685_vm0, %v684_v1 }
  0x1a   : > { %654 = vmatprep.subr.bf16.mxu0 %v684_v1 }
  0x1d   : > { %655 = vmatpush3.bf16.msra.mxu0 %v675_v17 }
  0x20   : > { %657 = vmatmul.mubr.msk.bf16.vlgmr.msra.gmra.mrb[4].mxu0 %vm325_vm1, %v310_v16 }
  0xeb   : > { %v363_v20 = vpop.f32.mrb[0].mxu0  ;;  %v425_v21 = vpop.f32.mrb[0].mxu1 }
  0xec   : > { %v642_v22 = vpop.f32.mrb[1].mxu0  ;;  %v650_v23 = vpop.f32.mrb[1].mxu1  ;;  %v370_v26 = vrot.slane %v363_v20, 7 }
  0xed   : > { %v366_v24 = vpop.f32.mrb[2].mxu0  ;;  %v428_v25 = vpop.f32.mrb[2].mxu1 }
  0xee   : > { %v371_v27 = vrot.slane %v366_v24, 7  ;;  %v643_v28 = vpop.f32.mrb[3].mxu0  ;;  %v651_v31 = vpop.f32.mrb[3].mxu1 }
  0xf0   : > { %v376_v32 = vsel %vm374_vm2, %v371_v27, %v370_v26  ;;  %v375_v33 = vsel %vm374_vm2, %v370_v26, %v371_v27 }
  0xf1   : > { %v377_v34 = vadd.f32 %v376_v32, %v311_v29  ;;  %v378_v35 = vadd.f32 %v375_v33, %v312_v30 }
  0xf3   : > { %v432_v36 = vadd.f32 %v425_v21, %v377_v34  ;;  %v433_v37 = vadd.f32 %v428_v25, %v378_v35  ;;  %v480_v38 = vpop.f32.mrb[4].mxu0 }
  0xf4   : > { %v658_v39 = vpop.f32.mrb[5].mxu0  ;;  %v487_v41 = vrot.slane %v480_v38, 1 }
  0xf5   : > { %v483_v40 = vpop.f32.mrb[6].mxu0 }
  0xf6   : > { %v488_v42 = vrot.slane %v483_v40, 1  ;;  %v659_v43 = vpop.f32.mrb[7].mxu0 }
  0xf8   : > { %v490_v44 = vsel %vm489_vm3, %v487_v41, %v488_v42  ;;  %v491_v45 = vsel %vm489_vm3, %v488_v42, %v487_v41 }
  0xf9   : > { %v492_v46 = vadd.f32 %v490_v44, %v432_v36  ;;  %v493_v47 = vadd.f32 %v491_v45, %v433_v37 }
  0xfb   : > { %495 = vst.msk [vmem:[%s284_s23] sm:$0xff] %vm494_vm4, %v492_v46  ;;  %496 = vst.msk [vmem:[%s284_s23 + $0x8] sm:$0xff] %vm494_vm4, %v493_v47 }
  0xfc PF: > { %s15_s18 = sadd.s32 1, %s682_s18  }
  0xfd   : > { %p12_p4 = scmp.ge.s32.totalorder %s15_s18, 4  }
  0xff   :  { %14 = sbr.rel (!%p12_p4) target bundleno = 1 (0x1), region = 81 }

</bundles_post_ra>
